<compile_context>
chip_gen: v7x
topology: tpu7x:2x2x1
jax: 0.10.0
libtpu: 0.0.40
codegen_flags: <defaults>
</compile_context>

<pallas_src>
import functools

import jax
import jax.numpy as jnp
import numpy as np
from jax.experimental import pallas as pl
from jax.experimental.pallas import tpu as pltpu

LANE = 128


# ----------------------------- helpers (plain JAX glue) -----------------------------

def _round_up(a, b):
    return (a + b - 1) // b * b


def _normalize_logits(u, axis=-1):
    """norm = u - (max + log(sum(exp(u - max))))  (matches TT._normalize_logits)."""
    m = jnp.max(u, axis=axis, keepdims=True)
    lse = jnp.log(jnp.sum(jnp.exp(u - m), axis=axis, keepdims=True))
    return u - (m + lse)


def _softplus(l):
    # max(l,0) + log(1+exp(-|l|))  == torch's BCE-with-logits softplus term
    return jnp.maximum(l, 0.0) + jnp.log(1.0 + jnp.exp(-jnp.abs(l)))


# ----------------------------------- Pallas kernel ----------------------------------

def tt_logprob_kernel(x_ref, pe1_ref, pe0_ref, ptransT_ref, out_ref):
    """Scaled linear-domain HMM forward for one batch tile (batch on the lane axis).

    x_ref:       (T, TN)     int8 observations (0/1), batch on lanes
    pe1_ref:     (A, T)      p(x_t = 1 | a_t);  column 0 pre-multiplied by p(a_1)
    pe0_ref:     (A, T)      p(x_t = 0 | a_t);  column 0 pre-multiplied by p(a_1)
    ptransT_ref: (T-1, A, A) PT[t, j, i] = p(a_{t+1} = j | a_t = i)
    out_ref:     (1, TN)     log p(x) per sample (lane-dense store)
    """
    T, tn = x_ref.shape
    A = pe1_ref.shape[0]

    def emit(t):
        # p(x_t | a_t = j): select from the precomputed probability tables
        # (exploits binary x -- no multiply, no transcendental, per-step row read).
        xb = x_ref[t:t + 1, :].astype(jnp.float32) > 0.5                 # (1, TN)
        return jnp.where(xb, pe1_ref[:, t:t + 1], pe0_ref[:, t:t + 1])   # (A, TN)

    def rescale(s, c):
        # Keep s in range; track the applied scale EXACTLY by reusing the same
        # (possibly approximate) reciprocal in both the multiply and the log, so the
        # EUP-cheap approx reciprocal introduces no accumulated error.
        m = jnp.maximum(jnp.max(s, axis=0, keepdims=True), 1e-30)        # (1, TN)
        r = pl.reciprocal(m, approx=True)
        return s * r, c - jnp.log(r)

    # s[j, n] = p(x_1, a_1 = j)   (prior p(a_1) is folded into the t = 0 table columns)
    s = emit(0)                                                          # (A, TN)
    c = jnp.zeros((1, tn), jnp.float32)

    for t in range(1, T):
        PT = ptransT_ref[t - 1]                                          # (A, A)
        # w[j, n] = sum_i PT[j, i] * s[i, n]  -- A broadcast FMAs on the VPU (no MXU)
        w = PT[:, 0:1] * s[0:1, :]
        for i in range(1, A):
            w = w + PT[:, i:i + 1] * s[i:i + 1, :]
        s = w * emit(t)
        if t % 2 == 1:                                                   # rescale every 2 steps (safe for small T, f32)
            s, c = rescale(s, c)

    # log p(x) = c + log(sum_j s[j])
    out_ref[...] = c + jnp.log(jnp.sum(s, axis=0, keepdims=True))        # (1, TN)


# ----------------------------------- wrapper -----------------------------------

@functools.partial(jax.jit, static_argnames=("batch_tile",))
def tt_forward(x, u_log_p_a1, u_log_transition, log_p_xi_g_ai, *, batch_tile=1024):
    """Equivalent of TT.forward(x) -> (log_px, log_p_a1)."""
    N, T = x.shape
    A = u_log_p_a1.shape[-1]

    log_p_a1 = _normalize_logits(u_log_p_a1)                  # (1, 1, 1, A)
    log_trans = _normalize_logits(u_log_transition)           # (T-1, A, A)

    # ---- parameter-only precompute (stays in XLA) ----
    logits = log_p_xi_g_ai.reshape(T, A).astype(jnp.float32)  # (T, A)
    pe1 = jax.nn.sigmoid(logits).T                            # (A, T)  p(x=1 | a)
    pe0 = jax.nn.sigmoid(-logits).T                           # (A, T)  p(x=0 | a)
    prior = jnp.exp(log_p_a1.reshape(A).astype(jnp.float32))  # (A,)
    pe1 = pe1.at[:, 0].multiply(prior)                        # fold p(a_1) into t = 0
    pe0 = pe0.at[:, 0].multiply(prior)
    # transitions as probabilities, transposed: PT[t, j, i] = P(a_{t+1}=j | a_t=i)
    ptransT = jnp.transpose(jnp.exp(log_trans), (0, 2, 1)).astype(jnp.float32)

    # ---- batch tiling: lanes = samples; prefer >= 2 grid steps (v7x megacore) ----
    cap = max(LANE, (batch_tile // LANE) * LANE)
    want = _round_up(max(pl.cdiv(N, 2), 1), LANE)             # ~half the batch per tile
    tile = min(cap, want)
    n_pad = _round_up(N, tile)

    # observations as int8 (4x fewer HBM bytes; converted to f32 per row in-kernel)
    xq = jnp.zeros((T, n_pad), jnp.int8).at[:, :N].set(x.astype(jnp.int8).T)

    lp = pl.pallas_call(
        tt_logprob_kernel,
        out_shape=jax.ShapeDtypeStruct((1, n_pad), jnp.float32),
        grid=(n_pad // tile,),
        in_specs=[
            pl.BlockSpec((T, tile), lambda i: (0, i)),
            pl.BlockSpec((A, T), lambda i: (0, 0)),
            pl.BlockSpec((A, T), lambda i: (0, 0)),
            pl.BlockSpec((T - 1, A, A), lambda i: (0, 0, 0)),
        ],
        out_specs=pl.BlockSpec((1, tile), lambda i: (0, i)),
        compiler_params=pltpu.CompilerParams(dimension_semantics=("parallel",)),
    )(xq, pe1.astype(jnp.float32), pe0.astype(jnp.float32), ptransT)

    # match the PyTorch output shape (N, A): every column holds the same log p(x)
    log_px = jnp.broadcast_to(lp[0, :N, None], (N, A))
    return log_px, log_p_a1


# ----------------------------- pure-JAX reference (for checking) ---------------------

def tt_forward_ref(x, u_log_p_a1, u_log_transition, log_p_xi_g_ai):
    N, T = x.shape
    A = u_log_p_a1.shape[-1]
    log_p_a1 = _normalize_logits(u_log_p_a1)
    log_trans = _normalize_logits(u_log_transition)

    xv = x[:, :, None, None]
    log_px_vectors = xv * log_p_xi_g_ai - _softplus(log_p_xi_g_ai)     # (N,T,1,A)
    red = log_px_vectors[:, 1:] + log_trans                            # (N,T-1,A,A)
    log_pxa1 = log_px_vectors[:, 0:1] + log_p_a1                       # (N,1,1,A)
    first = jnp.broadcast_to(log_pxa1, (N, 1, A, A))
    red = jnp.concatenate([first, red], axis=1)                        # (N,T,A,A)
    mats = jnp.transpose(red, (1, 0, 2, 3))                            # (T,N,A,A)

    def logexpmm(a, b):
        s = a[:, :, :, None] + b[:, None, :, :]                        # (N,A,K,A)
        m = jnp.max(s, axis=2, keepdims=True)
        return jnp.squeeze(m, 2) + jnp.log(jnp.sum(jnp.exp(s - m), axis=2))

    P = mats[0]
    for t in range(1, T):
        P = logexpmm(P, mats[t])
    log_px = jax.scipy.special.logsumexp(P, axis=-1)                   # (N, A)
    return log_px, log_p_a1


# ----------------------------------- demo -----------------------------------

if __name__ == "__main__":
    N, T, A = 200, 16, 4   # batch (deliberately not a tile multiple), input_size, alpha_dim

    key = jax.random.PRNGKey(0)
    k_x, k_p1, k_tr, k_em = jax.random.split(key, 4)

    # deterministic "normal_()" parameter init
    u_log_p_a1 = jax.random.normal(k_p1, (1, 1, 1, A), dtype=jnp.float32)
    u_log_transition = jax.random.normal(k_tr, (T - 1, A, A), dtype=jnp.float32)
    log_p_xi_g_ai = jax.random.normal(k_em, (1, T, 1, A), dtype=jnp.float32)

    # binary observations
    x = jax.random.bernoulli(k_x, 0.5, (N, T)).astype(jnp.float32)

    log_px, log_p_a1 = tt_forward(x, u_log_p_a1, u_log_transition, log_p_xi_g_ai)
    log_px = jax.block_until_ready(log_px)

    log_px_ref, log_p_a1_ref = tt_forward_ref(x, u_log_p_a1, u_log_transition, log_p_xi_g_ai)

    np.testing.assert_allclose(np.asarray(log_px), np.asarray(log_px_ref), atol=1e-4, rtol=1e-4)
    np.testing.assert_allclose(np.asarray(log_p_a1), np.asarray(log_p_a1_ref), atol=1e-6, rtol=1e-6)
    assert log_px.shape == (N, A) and log_p_a1.shape == (1, 1, 1, A)

    print("KERNEL_OK")
</pallas_src>

<mosaic_0001>
module attributes {stable_mosaic.version = 11 : i64} {
  func.func @tt_logprob_kernel(%arg0: i32, %arg1: memref<16x128xi8, #tpu.memory_space<vmem>>, %arg2: memref<4x16xf32, #tpu.memory_space<vmem>>, %arg3: memref<4x16xf32, #tpu.memory_space<vmem>>, %arg4: memref<15x4x4xf32, #tpu.memory_space<vmem>>, %arg5: memref<1x128xf32, #tpu.memory_space<vmem>>) attributes {dimension_semantics = [#tpu.dimension_semantics<parallel>], iteration_bounds = array<i64: 2>, scalar_prefetch = 0 : i64, scratch_operands = 0 : i64, tpu.core_type = #tpu.core_type<tc>, window_params = [{transform_indices = @transform_0, window_bounds = array<i64: 16, 128>}, {pipeline_mode = #tpu.pipeline_mode<synchronous>, transform_indices = @transform_1, window_bounds = array<i64: 4, 16>}, {pipeline_mode = #tpu.pipeline_mode<synchronous>, transform_indices = @transform_2, window_bounds = array<i64: 4, 16>}, {pipeline_mode = #tpu.pipeline_mode<synchronous>, transform_indices = @transform_3, window_bounds = array<i64: 15, 4, 4>}, {transform_indices = @transform_4, window_bounds = array<i64: 1, 128>}]} {
    %c0 = arith.constant 0 : index
    %c0_0 = arith.constant 0 : index
    %0 = vector.load %arg1[%c0, %c0_0] : memref<16x128xi8, #tpu.memory_space<vmem>>, vector<1x128xi8>
    %1 = arith.sitofp %0 : vector<1x128xi8> to vector<1x128xf32>
    %cst = arith.constant 5.000000e-01 : f32
    %2 = vector.broadcast %cst : f32 to vector<1x128xf32>
    %3 = arith.cmpf ogt, %1, %2 : vector<1x128xf32>
    %c0_1 = arith.constant 0 : index
    %c0_2 = arith.constant 0 : index
    %4 = vector.load %arg2[%c0_1, %c0_2] : memref<4x16xf32, #tpu.memory_space<vmem>>, vector<4x1xf32>
    %c0_3 = arith.constant 0 : index
    %c0_4 = arith.constant 0 : index
    %5 = vector.load %arg3[%c0_3, %c0_4] : memref<4x16xf32, #tpu.memory_space<vmem>>, vector<4x1xf32>
    %6 = vector.shape_cast %3 : vector<1x128xi1> to vector<1x128xi1>
    %7 = vector.broadcast %6 : vector<1x128xi1> to vector<4x128xi1>
    %8 = vector.shape_cast %4 : vector<4x1xf32> to vector<4x1xf32>
    %9 = vector.broadcast %8 : vector<4x1xf32> to vector<4x128xf32>
    %10 = vector.shape_cast %5 : vector<4x1xf32> to vector<4x1xf32>
    %11 = vector.broadcast %10 : vector<4x1xf32> to vector<4x128xf32>
    %12 = arith.select %7, %9, %11 : vector<4x128xi1>, vector<4x128xf32>
    %cst_5 = arith.constant 0.000000e+00 : f32
    %13 = vector.broadcast %cst_5 : f32 to vector<1x128xf32>
    %c0_6 = arith.constant 0 : index
    %c0_7 = arith.constant 0 : index
    %c0_8 = arith.constant 0 : index
    %14 = vector.load %arg4[%c0_6, %c0_7, %c0_8] : memref<15x4x4xf32, #tpu.memory_space<vmem>>, vector<1x4x4xf32>
    %15 = vector.shape_cast %14 : vector<1x4x4xf32> to vector<4x4xf32>
    %16 = vector.extract_strided_slice %15 {offsets = [0, 0], sizes = [4, 1], strides = [1, 1]} : vector<4x4xf32> to vector<4x1xf32>
    %17 = vector.extract_strided_slice %12 {offsets = [0, 0], sizes = [1, 128], strides = [1, 1]} : vector<4x128xf32> to vector<1x128xf32>
    %18 = vector.broadcast %16 : vector<4x1xf32> to vector<4x128xf32>
    %19 = vector.broadcast %17 : vector<1x128xf32> to vector<4x128xf32>
    %20 = arith.mulf %18, %19 : vector<4x128xf32>
    %21 = vector.extract_strided_slice %15 {offsets = [0, 1], sizes = [4, 1], strides = [1, 1]} : vector<4x4xf32> to vector<4x1xf32>
    %22 = vector.extract_strided_slice %12 {offsets = [1, 0], sizes = [1, 128], strides = [1, 1]} : vector<4x128xf32> to vector<1x128xf32>
    %23 = vector.broadcast %21 : vector<4x1xf32> to vector<4x128xf32>
    %24 = vector.broadcast %22 : vector<1x128xf32> to vector<4x128xf32>
    %25 = arith.mulf %23, %24 : vector<4x128xf32>
    %26 = arith.addf %20, %25 : vector<4x128xf32>
    %27 = vector.extract_strided_slice %15 {offsets = [0, 2], sizes = [4, 1], strides = [1, 1]} : vector<4x4xf32> to vector<4x1xf32>
    %28 = vector.extract_strided_slice %12 {offsets = [2, 0], sizes = [1, 128], strides = [1, 1]} : vector<4x128xf32> to vector<1x128xf32>
    %29 = vector.broadcast %27 : vector<4x1xf32> to vector<4x128xf32>
    %30 = vector.broadcast %28 : vector<1x128xf32> to vector<4x128xf32>
    %31 = arith.mulf %29, %30 : vector<4x128xf32>
    %32 = arith.addf %26, %31 : vector<4x128xf32>
    %33 = vector.extract_strided_slice %15 {offsets = [0, 3], sizes = [4, 1], strides = [1, 1]} : vector<4x4xf32> to vector<4x1xf32>
    %34 = vector.extract_strided_slice %12 {offsets = [3, 0], sizes = [1, 128], strides = [1, 1]} : vector<4x128xf32> to vector<1x128xf32>
    %35 = vector.broadcast %33 : vector<4x1xf32> to vector<4x128xf32>
    %36 = vector.broadcast %34 : vector<1x128xf32> to vector<4x128xf32>
    %37 = arith.mulf %35, %36 : vector<4x128xf32>
    %38 = arith.addf %32, %37 : vector<4x128xf32>
    %c1 = arith.constant 1 : index
    %c0_9 = arith.constant 0 : index
    %39 = vector.load %arg1[%c1, %c0_9] : memref<16x128xi8, #tpu.memory_space<vmem>>, vector<1x128xi8>
    %40 = arith.sitofp %39 : vector<1x128xi8> to vector<1x128xf32>
    %cst_10 = arith.constant 5.000000e-01 : f32
    %41 = vector.broadcast %cst_10 : f32 to vector<1x128xf32>
    %42 = arith.cmpf ogt, %40, %41 : vector<1x128xf32>
    %c0_11 = arith.constant 0 : index
    %c1_12 = arith.constant 1 : index
    %43 = vector.load %arg2[%c0_11, %c1_12] : memref<4x16xf32, #tpu.memory_space<vmem>>, vector<4x1xf32>
    %c0_13 = arith.constant 0 : index
    %c1_14 = arith.constant 1 : index
    %44 = vector.load %arg3[%c0_13, %c1_14] : memref<4x16xf32, #tpu.memory_space<vmem>>, vector<4x1xf32>
    %45 = vector.shape_cast %42 : vector<1x128xi1> to vector<1x128xi1>
    %46 = vector.broadcast %45 : vector<1x128xi1> to vector<4x128xi1>
    %47 = vector.shape_cast %43 : vector<4x1xf32> to vector<4x1xf32>
    %48 = vector.broadcast %47 : vector<4x1xf32> to vector<4x128xf32>
    %49 = vector.shape_cast %44 : vector<4x1xf32> to vector<4x1xf32>
    %50 = vector.broadcast %49 : vector<4x1xf32> to vector<4x128xf32>
    %51 = arith.select %46, %48, %50 : vector<4x128xi1>, vector<4x128xf32>
    %52 = arith.mulf %38, %51 : vector<4x128xf32>
    %cst_15 = arith.constant dense<0xFF800000> : vector<128xf32>
    %53 = vector.multi_reduction <maximumf>, %52, %cst_15 [0] : vector<4x128xf32> to vector<128xf32>
    %54 = vector.shape_cast %53 : vector<128xf32> to vector<1x128xf32>
    %cst_16 = arith.constant 1.000000e-30 : f32
    %55 = vector.broadcast %cst_16 : f32 to vector<1x128xf32>
    %56 = arith.maximumf %54, %55 : vector<1x128xf32>
    %57 = tpu.reciprocal %56 {approx = true} : vector<1x128xf32> -> vector<1x128xf32>
    %58 = vector.broadcast %57 : vector<1x128xf32> to vector<4x128xf32>
    %59 = arith.mulf %52, %58 : vector<4x128xf32>
    %60 = math.log %57 : vector<1x128xf32>
    %61 = arith.subf %13, %60 : vector<1x128xf32>
    %c1_17 = arith.constant 1 : index
    %c0_18 = arith.constant 0 : index
    %c0_19 = arith.constant 0 : index
    %62 = vector.load %arg4[%c1_17, %c0_18, %c0_19] : memref<15x4x4xf32, #tpu.memory_space<vmem>>, vector<1x4x4xf32>
    %63 = vector.shape_cast %62 : vector<1x4x4xf32> to vector<4x4xf32>
    %64 = vector.extract_strided_slice %63 {offsets = [0, 0], sizes = [4, 1], strides = [1, 1]} : vector<4x4xf32> to vector<4x1xf32>
    %65 = vector.extract_strided_slice %59 {offsets = [0, 0], sizes = [1, 128], strides = [1, 1]} : vector<4x128xf32> to vector<1x128xf32>
    %66 = vector.broadcast %64 : vector<4x1xf32> to vector<4x128xf32>
    %67 = vector.broadcast %65 : vector<1x128xf32> to vector<4x128xf32>
    %68 = arith.mulf %66, %67 : vector<4x128xf32>
    %69 = vector.extract_strided_slice %63 {offsets = [0, 1], sizes = [4, 1], strides = [1, 1]} : vector<4x4xf32> to vector<4x1xf32>
    %70 = vector.extract_strided_slice %59 {offsets = [1, 0], sizes = [1, 128], strides = [1, 1]} : vector<4x128xf32> to vector<1x128xf32>
    %71 = vector.broadcast %69 : vector<4x1xf32> to vector<4x128xf32>
    %72 = vector.broadcast %70 : vector<1x128xf32> to vector<4x128xf32>
    %73 = arith.mulf %71, %72 : vector<4x128xf32>
    %74 = arith.addf %68, %73 : vector<4x128xf32>
    %75 = vector.extract_strided_slice %63 {offsets = [0, 2], sizes = [4, 1], strides = [1, 1]} : vector<4x4xf32> to vector<4x1xf32>
    %76 = vector.extract_strided_slice %59 {offsets = [2, 0], sizes = [1, 128], strides = [1, 1]} : vector<4x128xf32> to vector<1x128xf32>
    %77 = vector.broadcast %75 : vector<4x1xf32> to vector<4x128xf32>
    %78 = vector.broadcast %76 : vector<1x128xf32> to vector<4x128xf32>
    %79 = arith.mulf %77, %78 : vector<4x128xf32>
    %80 = arith.addf %74, %79 : vector<4x128xf32>
    %81 = vector.extract_strided_slice %63 {offsets = [0, 3], sizes = [4, 1], strides = [1, 1]} : vector<4x4xf32> to vector<4x1xf32>
    %82 = vector.extract_strided_slice %59 {offsets = [3, 0], sizes = [1, 128], strides = [1, 1]} : vector<4x128xf32> to vector<1x128xf32>
    %83 = vector.broadcast %81 : vector<4x1xf32> to vector<4x128xf32>
    %84 = vector.broadcast %82 : vector<1x128xf32> to vector<4x128xf32>
    %85 = arith.mulf %83, %84 : vector<4x128xf32>
    %86 = arith.addf %80, %85 : vector<4x128xf32>
    %c2 = arith.constant 2 : index
    %c0_20 = arith.constant 0 : index
    %87 = vector.load %arg1[%c2, %c0_20] : memref<16x128xi8, #tpu.memory_space<vmem>>, vector<1x128xi8>
    %88 = arith.sitofp %87 : vector<1x128xi8> to vector<1x128xf32>
    %cst_21 = arith.constant 5.000000e-01 : f32
    %89 = vector.broadcast %cst_21 : f32 to vector<1x128xf32>
    %90 = arith.cmpf ogt, %88, %89 : vector<1x128xf32>
    %c0_22 = arith.constant 0 : index
    %c2_23 = arith.constant 2 : index
    %91 = vector.load %arg2[%c0_22, %c2_23] : memref<4x16xf32, #tpu.memory_space<vmem>>, vector<4x1xf32>
    %c0_24 = arith.constant 0 : index
    %c2_25 = arith.constant 2 : index
    %92 = vector.load %arg3[%c0_24, %c2_25] : memref<4x16xf32, #tpu.memory_space<vmem>>, vector<4x1xf32>
    %93 = vector.shape_cast %90 : vector<1x128xi1> to vector<1x128xi1>
    %94 = vector.broadcast %93 : vector<1x128xi1> to vector<4x128xi1>
    %95 = vector.shape_cast %91 : vector<4x1xf32> to vector<4x1xf32>
    %96 = vector.broadcast %95 : vector<4x1xf32> to vector<4x128xf32>
    %97 = vector.shape_cast %92 : vector<4x1xf32> to vector<4x1xf32>
    %98 = vector.broadcast %97 : vector<4x1xf32> to vector<4x128xf32>
    %99 = arith.select %94, %96, %98 : vector<4x128xi1>, vector<4x128xf32>
    %100 = arith.mulf %86, %99 : vector<4x128xf32>
    %c2_26 = arith.constant 2 : index
    %c0_27 = arith.constant 0 : index
    %c0_28 = arith.constant 0 : index
    %101 = vector.load %arg4[%c2_26, %c0_27, %c0_28] : memref<15x4x4xf32, #tpu.memory_space<vmem>>, vector<1x4x4xf32>
    %102 = vector.shape_cast %101 : vector<1x4x4xf32> to vector<4x4xf32>
    %103 = vector.extract_strided_slice %102 {offsets = [0, 0], sizes = [4, 1], strides = [1, 1]} : vector<4x4xf32> to vector<4x1xf32>
    %104 = vector.extract_strided_slice %100 {offsets = [0, 0], sizes = [1, 128], strides = [1, 1]} : vector<4x128xf32> to vector<1x128xf32>
    %105 = vector.broadcast %103 : vector<4x1xf32> to vector<4x128xf32>
    %106 = vector.broadcast %104 : vector<1x128xf32> to vector<4x128xf32>
    %107 = arith.mulf %105, %106 : vector<4x128xf32>
    %108 = vector.extract_strided_slice %102 {offsets = [0, 1], sizes = [4, 1], strides = [1, 1]} : vector<4x4xf32> to vector<4x1xf32>
    %109 = vector.extract_strided_slice %100 {offsets = [1, 0], sizes = [1, 128], strides = [1, 1]} : vector<4x128xf32> to vector<1x128xf32>
    %110 = vector.broadcast %108 : vector<4x1xf32> to vector<4x128xf32>
    %111 = vector.broadcast %109 : vector<1x128xf32> to vector<4x128xf32>
    %112 = arith.mulf %110, %111 : vector<4x128xf32>
    %113 = arith.addf %107, %112 : vector<4x128xf32>
    %114 = vector.extract_strided_slice %102 {offsets = [0, 2], sizes = [4, 1], strides = [1, 1]} : vector<4x4xf32> to vector<4x1xf32>
    %115 = vector.extract_strided_slice %100 {offsets = [2, 0], sizes = [1, 128], strides = [1, 1]} : vector<4x128xf32> to vector<1x128xf32>
    %116 = vector.broadcast %114 : vector<4x1xf32> to vector<4x128xf32>
    %117 = vector.broadcast %115 : vector<1x128xf32> to vector<4x128xf32>
    %118 = arith.mulf %116, %117 : vector<4x128xf32>
    %119 = arith.addf %113, %118 : vector<4x128xf32>
    %120 = vector.extract_strided_slice %102 {offsets = [0, 3], sizes = [4, 1], strides = [1, 1]} : vector<4x4xf32> to vector<4x1xf32>
    %121 = vector.extract_strided_slice %100 {offsets = [3, 0], sizes = [1, 128], strides = [1, 1]} : vector<4x128xf32> to vector<1x128xf32>
    %122 = vector.broadcast %120 : vector<4x1xf32> to vector<4x128xf32>
    %123 = vector.broadcast %121 : vector<1x128xf32> to vector<4x128xf32>
    %124 = arith.mulf %122, %123 : vector<4x128xf32>
    %125 = arith.addf %119, %124 : vector<4x128xf32>
    %c3 = arith.constant 3 : index
    %c0_29 = arith.constant 0 : index
    %126 = vector.load %arg1[%c3, %c0_29] : memref<16x128xi8, #tpu.memory_space<vmem>>, vector<1x128xi8>
    %127 = arith.sitofp %126 : vector<1x128xi8> to vector<1x128xf32>
    %cst_30 = arith.constant 5.000000e-01 : f32
    %128 = vector.broadcast %cst_30 : f32 to vector<1x128xf32>
    %129 = arith.cmpf ogt, %127, %128 : vector<1x128xf32>
    %c0_31 = arith.constant 0 : index
    %c3_32 = arith.constant 3 : index
    %130 = vector.load %arg2[%c0_31, %c3_32] : memref<4x16xf32, #tpu.memory_space<vmem>>, vector<4x1xf32>
    %c0_33 = arith.constant 0 : index
    %c3_34 = arith.constant 3 : index
    %131 = vector.load %arg3[%c0_33, %c3_34] : memref<4x16xf32, #tpu.memory_space<vmem>>, vector<4x1xf32>
    %132 = vector.shape_cast %129 : vector<1x128xi1> to vector<1x128xi1>
    %133 = vector.broadcast %132 : vector<1x128xi1> to vector<4x128xi1>
    %134 = vector.shape_cast %130 : vector<4x1xf32> to vector<4x1xf32>
    %135 = vector.broadcast %134 : vector<4x1xf32> to vector<4x128xf32>
    %136 = vector.shape_cast %131 : vector<4x1xf32> to vector<4x1xf32>
    %137 = vector.broadcast %136 : vector<4x1xf32> to vector<4x128xf32>
    %138 = arith.select %133, %135, %137 : vector<4x128xi1>, vector<4x128xf32>
    %139 = arith.mulf %125, %138 : vector<4x128xf32>
    %cst_35 = arith.constant dense<0xFF800000> : vector<128xf32>
    %140 = vector.multi_reduction <maximumf>, %139, %cst_35 [0] : vector<4x128xf32> to vector<128xf32>
    %141 = vector.shape_cast %140 : vector<128xf32> to vector<1x128xf32>
    %cst_36 = arith.constant 1.000000e-30 : f32
    %142 = vector.broadcast %cst_36 : f32 to vector<1x128xf32>
    %143 = arith.maximumf %141, %142 : vector<1x128xf32>
    %144 = tpu.reciprocal %143 {approx = true} : vector<1x128xf32> -> vector<1x128xf32>
    %145 = vector.broadcast %144 : vector<1x128xf32> to vector<4x128xf32>
    %146 = arith.mulf %139, %145 : vector<4x128xf32>
    %147 = math.log %144 : vector<1x128xf32>
    %148 = arith.subf %61, %147 : vector<1x128xf32>
    %c3_37 = arith.constant 3 : index
    %c0_38 = arith.constant 0 : index
    %c0_39 = arith.constant 0 : index
    %149 = vector.load %arg4[%c3_37, %c0_38, %c0_39] : memref<15x4x4xf32, #tpu.memory_space<vmem>>, vector<1x4x4xf32>
    %150 = vector.shape_cast %149 : vector<1x4x4xf32> to vector<4x4xf32>
    %151 = vector.extract_strided_slice %150 {offsets = [0, 0], sizes = [4, 1], strides = [1, 1]} : vector<4x4xf32> to vector<4x1xf32>
    %152 = vector.extract_strided_slice %146 {offsets = [0, 0], sizes = [1, 128], strides = [1, 1]} : vector<4x128xf32> to vector<1x128xf32>
    %153 = vector.broadcast %151 : vector<4x1xf32> to vector<4x128xf32>
    %154 = vector.broadcast %152 : vector<1x128xf32> to vector<4x128xf32>
    %155 = arith.mulf %153, %154 : vector<4x128xf32>
    %156 = vector.extract_strided_slice %150 {offsets = [0, 1], sizes = [4, 1], strides = [1, 1]} : vector<4x4xf32> to vector<4x1xf32>
    %157 = vector.extract_strided_slice %146 {offsets = [1, 0], sizes = [1, 128], strides = [1, 1]} : vector<4x128xf32> to vector<1x128xf32>
    %158 = vector.broadcast %156 : vector<4x1xf32> to vector<4x128xf32>
    %159 = vector.broadcast %157 : vector<1x128xf32> to vector<4x128xf32>
    %160 = arith.mulf %158, %159 : vector<4x128xf32>
    %161 = arith.addf %155, %160 : vector<4x128xf32>
    %162 = vector.extract_strided_slice %150 {offsets = [0, 2], sizes = [4, 1], strides = [1, 1]} : vector<4x4xf32> to vector<4x1xf32>
    %163 = vector.extract_strided_slice %146 {offsets = [2, 0], sizes = [1, 128], strides = [1, 1]} : vector<4x128xf32> to vector<1x128xf32>
    %164 = vector.broadcast %162 : vector<4x1xf32> to vector<4x128xf32>
    %165 = vector.broadcast %163 : vector<1x128xf32> to vector<4x128xf32>
    %166 = arith.mulf %164, %165 : vector<4x128xf32>
    %167 = arith.addf %161, %166 : vector<4x128xf32>
    %168 = vector.extract_strided_slice %150 {offsets = [0, 3], sizes = [4, 1], strides = [1, 1]} : vector<4x4xf32> to vector<4x1xf32>
    %169 = vector.extract_strided_slice %146 {offsets = [3, 0], sizes = [1, 128], strides = [1, 1]} : vector<4x128xf32> to vector<1x128xf32>
    %170 = vector.broadcast %168 : vector<4x1xf32> to vector<4x128xf32>
    %171 = vector.broadcast %169 : vector<1x128xf32> to vector<4x128xf32>
    %172 = arith.mulf %170, %171 : vector<4x128xf32>
    %173 = arith.addf %167, %172 : vector<4x128xf32>
    %c4 = arith.constant 4 : index
    %c0_40 = arith.constant 0 : index
    %174 = vector.load %arg1[%c4, %c0_40] : memref<16x128xi8, #tpu.memory_space<vmem>>, vector<1x128xi8>
    %175 = arith.sitofp %174 : vector<1x128xi8> to vector<1x128xf32>
    %cst_41 = arith.constant 5.000000e-01 : f32
    %176 = vector.broadcast %cst_41 : f32 to vector<1x128xf32>
    %177 = arith.cmpf ogt, %175, %176 : vector<1x128xf32>
    %c0_42 = arith.constant 0 : index
    %c4_43 = arith.constant 4 : index
    %178 = vector.load %arg2[%c0_42, %c4_43] : memref<4x16xf32, #tpu.memory_space<vmem>>, vector<4x1xf32>
    %c0_44 = arith.constant 0 : index
    %c4_45 = arith.constant 4 : index
    %179 = vector.load %arg3[%c0_44, %c4_45] : memref<4x16xf32, #tpu.memory_space<vmem>>, vector<4x1xf32>
    %180 = vector.shape_cast %177 : vector<1x128xi1> to vector<1x128xi1>
    %181 = vector.broadcast %180 : vector<1x128xi1> to vector<4x128xi1>
    %182 = vector.shape_cast %178 : vector<4x1xf32> to vector<4x1xf32>
    %183 = vector.broadcast %182 : vector<4x1xf32> to vector<4x128xf32>
    %184 = vector.shape_cast %179 : vector<4x1xf32> to vector<4x1xf32>
    %185 = vector.broadcast %184 : vector<4x1xf32> to vector<4x128xf32>
    %186 = arith.select %181, %183, %185 : vector<4x128xi1>, vector<4x128xf32>
    %187 = arith.mulf %173, %186 : vector<4x128xf32>
    %c4_46 = arith.constant 4 : index
    %c0_47 = arith.constant 0 : index
    %c0_48 = arith.constant 0 : index
    %188 = vector.load %arg4[%c4_46, %c0_47, %c0_48] : memref<15x4x4xf32, #tpu.memory_space<vmem>>, vector<1x4x4xf32>
    %189 = vector.shape_cast %188 : vector<1x4x4xf32> to vector<4x4xf32>
    %190 = vector.extract_strided_slice %189 {offsets = [0, 0], sizes = [4, 1], strides = [1, 1]} : vector<4x4xf32> to vector<4x1xf32>
    %191 = vector.extract_strided_slice %187 {offsets = [0, 0], sizes = [1, 128], strides = [1, 1]} : vector<4x128xf32> to vector<1x128xf32>
    %192 = vector.broadcast %190 : vector<4x1xf32> to vector<4x128xf32>
    %193 = vector.broadcast %191 : vector<1x128xf32> to vector<4x128xf32>
    %194 = arith.mulf %192, %193 : vector<4x128xf32>
    %195 = vector.extract_strided_slice %189 {offsets = [0, 1], sizes = [4, 1], strides = [1, 1]} : vector<4x4xf32> to vector<4x1xf32>
    %196 = vector.extract_strided_slice %187 {offsets = [1, 0], sizes = [1, 128], strides = [1, 1]} : vector<4x128xf32> to vector<1x128xf32>
    %197 = vector.broadcast %195 : vector<4x1xf32> to vector<4x128xf32>
    %198 = vector.broadcast %196 : vector<1x128xf32> to vector<4x128xf32>
    %199 = arith.mulf %197, %198 : vector<4x128xf32>
    %200 = arith.addf %194, %199 : vector<4x128xf32>
    %201 = vector.extract_strided_slice %189 {offsets = [0, 2], sizes = [4, 1], strides = [1, 1]} : vector<4x4xf32> to vector<4x1xf32>
    %202 = vector.extract_strided_slice %187 {offsets = [2, 0], sizes = [1, 128], strides = [1, 1]} : vector<4x128xf32> to vector<1x128xf32>
    %203 = vector.broadcast %201 : vector<4x1xf32> to vector<4x128xf32>
    %204 = vector.broadcast %202 : vector<1x128xf32> to vector<4x128xf32>
    %205 = arith.mulf %203, %204 : vector<4x128xf32>
    %206 = arith.addf %200, %205 : vector<4x128xf32>
    %207 = vector.extract_strided_slice %189 {offsets = [0, 3], sizes = [4, 1], strides = [1, 1]} : vector<4x4xf32> to vector<4x1xf32>
    %208 = vector.extract_strided_slice %187 {offsets = [3, 0], sizes = [1, 128], strides = [1, 1]} : vector<4x128xf32> to vector<1x128xf32>
    %209 = vector.broadcast %207 : vector<4x1xf32> to vector<4x128xf32>
    %210 = vector.broadcast %208 : vector<1x128xf32> to vector<4x128xf32>
    %211 = arith.mulf %209, %210 : vector<4x128xf32>
    %212 = arith.addf %206, %211 : vector<4x128xf32>
    %c5 = arith.constant 5 : index
    %c0_49 = arith.constant 0 : index
    %213 = vector.load %arg1[%c5, %c0_49] : memref<16x128xi8, #tpu.memory_space<vmem>>, vector<1x128xi8>
    %214 = arith.sitofp %213 : vector<1x128xi8> to vector<1x128xf32>
    %cst_50 = arith.constant 5.000000e-01 : f32
    %215 = vector.broadcast %cst_50 : f32 to vector<1x128xf32>
    %216 = arith.cmpf ogt, %214, %215 : vector<1x128xf32>
    %c0_51 = arith.constant 0 : index
    %c5_52 = arith.constant 5 : index
    %217 = vector.load %arg2[%c0_51, %c5_52] : memref<4x16xf32, #tpu.memory_space<vmem>>, vector<4x1xf32>
    %c0_53 = arith.constant 0 : index
    %c5_54 = arith.constant 5 : index
    %218 = vector.load %arg3[%c0_53, %c5_54] : memref<4x16xf32, #tpu.memory_space<vmem>>, vector<4x1xf32>
    %219 = vector.shape_cast %216 : vector<1x128xi1> to vector<1x128xi1>
    %220 = vector.broadcast %219 : vector<1x128xi1> to vector<4x128xi1>
    %221 = vector.shape_cast %217 : vector<4x1xf32> to vector<4x1xf32>
    %222 = vector.broadcast %221 : vector<4x1xf32> to vector<4x128xf32>
    %223 = vector.shape_cast %218 : vector<4x1xf32> to vector<4x1xf32>
    %224 = vector.broadcast %223 : vector<4x1xf32> to vector<4x128xf32>
    %225 = arith.select %220, %222, %224 : vector<4x128xi1>, vector<4x128xf32>
    %226 = arith.mulf %212, %225 : vector<4x128xf32>
    %cst_55 = arith.constant dense<0xFF800000> : vector<128xf32>
    %227 = vector.multi_reduction <maximumf>, %226, %cst_55 [0] : vector<4x128xf32> to vector<128xf32>
    %228 = vector.shape_cast %227 : vector<128xf32> to vector<1x128xf32>
    %cst_56 = arith.constant 1.000000e-30 : f32
    %229 = vector.broadcast %cst_56 : f32 to vector<1x128xf32>
    %230 = arith.maximumf %228, %229 : vector<1x128xf32>
    %231 = tpu.reciprocal %230 {approx = true} : vector<1x128xf32> -> vector<1x128xf32>
    %232 = vector.broadcast %231 : vector<1x128xf32> to vector<4x128xf32>
    %233 = arith.mulf %226, %232 : vector<4x128xf32>
    %234 = math.log %231 : vector<1x128xf32>
    %235 = arith.subf %148, %234 : vector<1x128xf32>
    %c5_57 = arith.constant 5 : index
    %c0_58 = arith.constant 0 : index
    %c0_59 = arith.constant 0 : index
    %236 = vector.load %arg4[%c5_57, %c0_58, %c0_59] : memref<15x4x4xf32, #tpu.memory_space<vmem>>, vector<1x4x4xf32>
    %237 = vector.shape_cast %236 : vector<1x4x4xf32> to vector<4x4xf32>
    %238 = vector.extract_strided_slice %237 {offsets = [0, 0], sizes = [4, 1], strides = [1, 1]} : vector<4x4xf32> to vector<4x1xf32>
    %239 = vector.extract_strided_slice %233 {offsets = [0, 0], sizes = [1, 128], strides = [1, 1]} : vector<4x128xf32> to vector<1x128xf32>
    %240 = vector.broadcast %238 : vector<4x1xf32> to vector<4x128xf32>
    %241 = vector.broadcast %239 : vector<1x128xf32> to vector<4x128xf32>
    %242 = arith.mulf %240, %241 : vector<4x128xf32>
    %243 = vector.extract_strided_slice %237 {offsets = [0, 1], sizes = [4, 1], strides = [1, 1]} : vector<4x4xf32> to vector<4x1xf32>
    %244 = vector.extract_strided_slice %233 {offsets = [1, 0], sizes = [1, 128], strides = [1, 1]} : vector<4x128xf32> to vector<1x128xf32>
    %245 = vector.broadcast %243 : vector<4x1xf32> to vector<4x128xf32>
    %246 = vector.broadcast %244 : vector<1x128xf32> to vector<4x128xf32>
    %247 = arith.mulf %245, %246 : vector<4x128xf32>
    %248 = arith.addf %242, %247 : vector<4x128xf32>
    %249 = vector.extract_strided_slice %237 {offsets = [0, 2], sizes = [4, 1], strides = [1, 1]} : vector<4x4xf32> to vector<4x1xf32>
    %250 = vector.extract_strided_slice %233 {offsets = [2, 0], sizes = [1, 128], strides = [1, 1]} : vector<4x128xf32> to vector<1x128xf32>
    %251 = vector.broadcast %249 : vector<4x1xf32> to vector<4x128xf32>
    %252 = vector.broadcast %250 : vector<1x128xf32> to vector<4x128xf32>
    %253 = arith.mulf %251, %252 : vector<4x128xf32>
    %254 = arith.addf %248, %253 : vector<4x128xf32>
    %255 = vector.extract_strided_slice %237 {offsets = [0, 3], sizes = [4, 1], strides = [1, 1]} : vector<4x4xf32> to vector<4x1xf32>
    %256 = vector.extract_strided_slice %233 {offsets = [3, 0], sizes = [1, 128], strides = [1, 1]} : vector<4x128xf32> to vector<1x128xf32>
    %257 = vector.broadcast %255 : vector<4x1xf32> to vector<4x128xf32>
    %258 = vector.broadcast %256 : vector<1x128xf32> to vector<4x128xf32>
    %259 = arith.mulf %257, %258 : vector<4x128xf32>
    %260 = arith.addf %254, %259 : vector<4x128xf32>
    %c6 = arith.constant 6 : index
    %c0_60 = arith.constant 0 : index
    %261 = vector.load %arg1[%c6, %c0_60] : memref<16x128xi8, #tpu.memory_space<vmem>>, vector<1x128xi8>
    %262 = arith.sitofp %261 : vector<1x128xi8> to vector<1x128xf32>
    %cst_61 = arith.constant 5.000000e-01 : f32
    %263 = vector.broadcast %cst_61 : f32 to vector<1x128xf32>
    %264 = arith.cmpf ogt, %262, %263 : vector<1x128xf32>
    %c0_62 = arith.constant 0 : index
    %c6_63 = arith.constant 6 : index
    %265 = vector.load %arg2[%c0_62, %c6_63] : memref<4x16xf32, #tpu.memory_space<vmem>>, vector<4x1xf32>
    %c0_64 = arith.constant 0 : index
    %c6_65 = arith.constant 6 : index
    %266 = vector.load %arg3[%c0_64, %c6_65] : memref<4x16xf32, #tpu.memory_space<vmem>>, vector<4x1xf32>
    %267 = vector.shape_cast %264 : vector<1x128xi1> to vector<1x128xi1>
    %268 = vector.broadcast %267 : vector<1x128xi1> to vector<4x128xi1>
    %269 = vector.shape_cast %265 : vector<4x1xf32> to vector<4x1xf32>
    %270 = vector.broadcast %269 : vector<4x1xf32> to vector<4x128xf32>
    %271 = vector.shape_cast %266 : vector<4x1xf32> to vector<4x1xf32>
    %272 = vector.broadcast %271 : vector<4x1xf32> to vector<4x128xf32>
    %273 = arith.select %268, %270, %272 : vector<4x128xi1>, vector<4x128xf32>
    %274 = arith.mulf %260, %273 : vector<4x128xf32>
    %c6_66 = arith.constant 6 : index
    %c0_67 = arith.constant 0 : index
    %c0_68 = arith.constant 0 : index
    %275 = vector.load %arg4[%c6_66, %c0_67, %c0_68] : memref<15x4x4xf32, #tpu.memory_space<vmem>>, vector<1x4x4xf32>
    %276 = vector.shape_cast %275 : vector<1x4x4xf32> to vector<4x4xf32>
    %277 = vector.extract_strided_slice %276 {offsets = [0, 0], sizes = [4, 1], strides = [1, 1]} : vector<4x4xf32> to vector<4x1xf32>
    %278 = vector.extract_strided_slice %274 {offsets = [0, 0], sizes = [1, 128], strides = [1, 1]} : vector<4x128xf32> to vector<1x128xf32>
    %279 = vector.broadcast %277 : vector<4x1xf32> to vector<4x128xf32>
    %280 = vector.broadcast %278 : vector<1x128xf32> to vector<4x128xf32>
    %281 = arith.mulf %279, %280 : vector<4x128xf32>
    %282 = vector.extract_strided_slice %276 {offsets = [0, 1], sizes = [4, 1], strides = [1, 1]} : vector<4x4xf32> to vector<4x1xf32>
    %283 = vector.extract_strided_slice %274 {offsets = [1, 0], sizes = [1, 128], strides = [1, 1]} : vector<4x128xf32> to vector<1x128xf32>
    %284 = vector.broadcast %282 : vector<4x1xf32> to vector<4x128xf32>
    %285 = vector.broadcast %283 : vector<1x128xf32> to vector<4x128xf32>
    %286 = arith.mulf %284, %285 : vector<4x128xf32>
    %287 = arith.addf %281, %286 : vector<4x128xf32>
    %288 = vector.extract_strided_slice %276 {offsets = [0, 2], sizes = [4, 1], strides = [1, 1]} : vector<4x4xf32> to vector<4x1xf32>
    %289 = vector.extract_strided_slice %274 {offsets = [2, 0], sizes = [1, 128], strides = [1, 1]} : vector<4x128xf32> to vector<1x128xf32>
    %290 = vector.broadcast %288 : vector<4x1xf32> to vector<4x128xf32>
    %291 = vector.broadcast %289 : vector<1x128xf32> to vector<4x128xf32>
    %292 = arith.mulf %290, %291 : vector<4x128xf32>
    %293 = arith.addf %287, %292 : vector<4x128xf32>
    %294 = vector.extract_strided_slice %276 {offsets = [0, 3], sizes = [4, 1], strides = [1, 1]} : vector<4x4xf32> to vector<4x1xf32>
    %295 = vector.extract_strided_slice %274 {offsets = [3, 0], sizes = [1, 128], strides = [1, 1]} : vector<4x128xf32> to vector<1x128xf32>
    %296 = vector.broadcast %294 : vector<4x1xf32> to vector<4x128xf32>
    %297 = vector.broadcast %295 : vector<1x128xf32> to vector<4x128xf32>
    %298 = arith.mulf %296, %297 : vector<4x128xf32>
    %299 = arith.addf %293, %298 : vector<4x128xf32>
    %c7 = arith.constant 7 : index
    %c0_69 = arith.constant 0 : index
    %300 = vector.load %arg1[%c7, %c0_69] : memref<16x128xi8, #tpu.memory_space<vmem>>, vector<1x128xi8>
    %301 = arith.sitofp %300 : vector<1x128xi8> to vector<1x128xf32>
    %cst_70 = arith.constant 5.000000e-01 : f32
    %302 = vector.broadcast %cst_70 : f32 to vector<1x128xf32>
    %303 = arith.cmpf ogt, %301, %302 : vector<1x128xf32>
    %c0_71 = arith.constant 0 : index
    %c7_72 = arith.constant 7 : index
    %304 = vector.load %arg2[%c0_71, %c7_72] : memref<4x16xf32, #tpu.memory_space<vmem>>, vector<4x1xf32>
    %c0_73 = arith.constant 0 : index
    %c7_74 = arith.constant 7 : index
    %305 = vector.load %arg3[%c0_73, %c7_74] : memref<4x16xf32, #tpu.memory_space<vmem>>, vector<4x1xf32>
    %306 = vector.shape_cast %303 : vector<1x128xi1> to vector<1x128xi1>
    %307 = vector.broadcast %306 : vector<1x128xi1> to vector<4x128xi1>
    %308 = vector.shape_cast %304 : vector<4x1xf32> to vector<4x1xf32>
    %309 = vector.broadcast %308 : vector<4x1xf32> to vector<4x128xf32>
    %310 = vector.shape_cast %305 : vector<4x1xf32> to vector<4x1xf32>
    %311 = vector.broadcast %310 : vector<4x1xf32> to vector<4x128xf32>
    %312 = arith.select %307, %309, %311 : vector<4x128xi1>, vector<4x128xf32>
    %313 = arith.mulf %299, %312 : vector<4x128xf32>
    %cst_75 = arith.constant dense<0xFF800000> : vector<128xf32>
    %314 = vector.multi_reduction <maximumf>, %313, %cst_75 [0] : vector<4x128xf32> to vector<128xf32>
    %315 = vector.shape_cast %314 : vector<128xf32> to vector<1x128xf32>
    %cst_76 = arith.constant 1.000000e-30 : f32
    %316 = vector.broadcast %cst_76 : f32 to vector<1x128xf32>
    %317 = arith.maximumf %315, %316 : vector<1x128xf32>
    %318 = tpu.reciprocal %317 {approx = true} : vector<1x128xf32> -> vector<1x128xf32>
    %319 = vector.broadcast %318 : vector<1x128xf32> to vector<4x128xf32>
    %320 = arith.mulf %313, %319 : vector<4x128xf32>
    %321 = math.log %318 : vector<1x128xf32>
    %322 = arith.subf %235, %321 : vector<1x128xf32>
    %c7_77 = arith.constant 7 : index
    %c0_78 = arith.constant 0 : index
    %c0_79 = arith.constant 0 : index
    %323 = vector.load %arg4[%c7_77, %c0_78, %c0_79] : memref<15x4x4xf32, #tpu.memory_space<vmem>>, vector<1x4x4xf32>
    %324 = vector.shape_cast %323 : vector<1x4x4xf32> to vector<4x4xf32>
    %325 = vector.extract_strided_slice %324 {offsets = [0, 0], sizes = [4, 1], strides = [1, 1]} : vector<4x4xf32> to vector<4x1xf32>
    %326 = vector.extract_strided_slice %320 {offsets = [0, 0], sizes = [1, 128], strides = [1, 1]} : vector<4x128xf32> to vector<1x128xf32>
    %327 = vector.broadcast %325 : vector<4x1xf32> to vector<4x128xf32>
    %328 = vector.broadcast %326 : vector<1x128xf32> to vector<4x128xf32>
    %329 = arith.mulf %327, %328 : vector<4x128xf32>
    %330 = vector.extract_strided_slice %324 {offsets = [0, 1], sizes = [4, 1], strides = [1, 1]} : vector<4x4xf32> to vector<4x1xf32>
    %331 = vector.extract_strided_slice %320 {offsets = [1, 0], sizes = [1, 128], strides = [1, 1]} : vector<4x128xf32> to vector<1x128xf32>
    %332 = vector.broadcast %330 : vector<4x1xf32> to vector<4x128xf32>
    %333 = vector.broadcast %331 : vector<1x128xf32> to vector<4x128xf32>
    %334 = arith.mulf %332, %333 : vector<4x128xf32>
    %335 = arith.addf %329, %334 : vector<4x128xf32>
    %336 = vector.extract_strided_slice %324 {offsets = [0, 2], sizes = [4, 1], strides = [1, 1]} : vector<4x4xf32> to vector<4x1xf32>
    %337 = vector.extract_strided_slice %320 {offsets = [2, 0], sizes = [1, 128], strides = [1, 1]} : vector<4x128xf32> to vector<1x128xf32>
    %338 = vector.broadcast %336 : vector<4x1xf32> to vector<4x128xf32>
    %339 = vector.broadcast %337 : vector<1x128xf32> to vector<4x128xf32>
    %340 = arith.mulf %338, %339 : vector<4x128xf32>
    %341 = arith.addf %335, %340 : vector<4x128xf32>
    %342 = vector.extract_strided_slice %324 {offsets = [0, 3], sizes = [4, 1], strides = [1, 1]} : vector<4x4xf32> to vector<4x1xf32>
    %343 = vector.extract_strided_slice %320 {offsets = [3, 0], sizes = [1, 128], strides = [1, 1]} : vector<4x128xf32> to vector<1x128xf32>
    %344 = vector.broadcast %342 : vector<4x1xf32> to vector<4x128xf32>
    %345 = vector.broadcast %343 : vector<1x128xf32> to vector<4x128xf32>
    %346 = arith.mulf %344, %345 : vector<4x128xf32>
    %347 = arith.addf %341, %346 : vector<4x128xf32>
    %c8 = arith.constant 8 : index
    %c0_80 = arith.constant 0 : index
    %348 = vector.load %arg1[%c8, %c0_80] : memref<16x128xi8, #tpu.memory_space<vmem>>, vector<1x128xi8>
    %349 = arith.sitofp %348 : vector<1x128xi8> to vector<1x128xf32>
    %cst_81 = arith.constant 5.000000e-01 : f32
    %350 = vector.broadcast %cst_81 : f32 to vector<1x128xf32>
    %351 = arith.cmpf ogt, %349, %350 : vector<1x128xf32>
    %c0_82 = arith.constant 0 : index
    %c8_83 = arith.constant 8 : index
    %352 = vector.load %arg2[%c0_82, %c8_83] : memref<4x16xf32, #tpu.memory_space<vmem>>, vector<4x1xf32>
    %c0_84 = arith.constant 0 : index
    %c8_85 = arith.constant 8 : index
    %353 = vector.load %arg3[%c0_84, %c8_85] : memref<4x16xf32, #tpu.memory_space<vmem>>, vector<4x1xf32>
    %354 = vector.shape_cast %351 : vector<1x128xi1> to vector<1x128xi1>
    %355 = vector.broadcast %354 : vector<1x128xi1> to vector<4x128xi1>
    %356 = vector.shape_cast %352 : vector<4x1xf32> to vector<4x1xf32>
    %357 = vector.broadcast %356 : vector<4x1xf32> to vector<4x128xf32>
    %358 = vector.shape_cast %353 : vector<4x1xf32> to vector<4x1xf32>
    %359 = vector.broadcast %358 : vector<4x1xf32> to vector<4x128xf32>
    %360 = arith.select %355, %357, %359 : vector<4x128xi1>, vector<4x128xf32>
    %361 = arith.mulf %347, %360 : vector<4x128xf32>
    %c8_86 = arith.constant 8 : index
    %c0_87 = arith.constant 0 : index
    %c0_88 = arith.constant 0 : index
    %362 = vector.load %arg4[%c8_86, %c0_87, %c0_88] : memref<15x4x4xf32, #tpu.memory_space<vmem>>, vector<1x4x4xf32>
    %363 = vector.shape_cast %362 : vector<1x4x4xf32> to vector<4x4xf32>
    %364 = vector.extract_strided_slice %363 {offsets = [0, 0], sizes = [4, 1], strides = [1, 1]} : vector<4x4xf32> to vector<4x1xf32>
    %365 = vector.extract_strided_slice %361 {offsets = [0, 0], sizes = [1, 128], strides = [1, 1]} : vector<4x128xf32> to vector<1x128xf32>
    %366 = vector.broadcast %364 : vector<4x1xf32> to vector<4x128xf32>
    %367 = vector.broadcast %365 : vector<1x128xf32> to vector<4x128xf32>
    %368 = arith.mulf %366, %367 : vector<4x128xf32>
    %369 = vector.extract_strided_slice %363 {offsets = [0, 1], sizes = [4, 1], strides = [1, 1]} : vector<4x4xf32> to vector<4x1xf32>
    %370 = vector.extract_strided_slice %361 {offsets = [1, 0], sizes = [1, 128], strides = [1, 1]} : vector<4x128xf32> to vector<1x128xf32>
    %371 = vector.broadcast %369 : vector<4x1xf32> to vector<4x128xf32>
    %372 = vector.broadcast %370 : vector<1x128xf32> to vector<4x128xf32>
    %373 = arith.mulf %371, %372 : vector<4x128xf32>
    %374 = arith.addf %368, %373 : vector<4x128xf32>
    %375 = vector.extract_strided_slice %363 {offsets = [0, 2], sizes = [4, 1], strides = [1, 1]} : vector<4x4xf32> to vector<4x1xf32>
    %376 = vector.extract_strided_slice %361 {offsets = [2, 0], sizes = [1, 128], strides = [1, 1]} : vector<4x128xf32> to vector<1x128xf32>
    %377 = vector.broadcast %375 : vector<4x1xf32> to vector<4x128xf32>
    %378 = vector.broadcast %376 : vector<1x128xf32> to vector<4x128xf32>
    %379 = arith.mulf %377, %378 : vector<4x128xf32>
    %380 = arith.addf %374, %379 : vector<4x128xf32>
    %381 = vector.extract_strided_slice %363 {offsets = [0, 3], sizes = [4, 1], strides = [1, 1]} : vector<4x4xf32> to vector<4x1xf32>
    %382 = vector.extract_strided_slice %361 {offsets = [3, 0], sizes = [1, 128], strides = [1, 1]} : vector<4x128xf32> to vector<1x128xf32>
    %383 = vector.broadcast %381 : vector<4x1xf32> to vector<4x128xf32>
    %384 = vector.broadcast %382 : vector<1x128xf32> to vector<4x128xf32>
    %385 = arith.mulf %383, %384 : vector<4x128xf32>
    %386 = arith.addf %380, %385 : vector<4x128xf32>
    %c9 = arith.constant 9 : index
    %c0_89 = arith.constant 0 : index
    %387 = vector.load %arg1[%c9, %c0_89] : memref<16x128xi8, #tpu.memory_space<vmem>>, vector<1x128xi8>
    %388 = arith.sitofp %387 : vector<1x128xi8> to vector<1x128xf32>
    %cst_90 = arith.constant 5.000000e-01 : f32
    %389 = vector.broadcast %cst_90 : f32 to vector<1x128xf32>
    %390 = arith.cmpf ogt, %388, %389 : vector<1x128xf32>
    %c0_91 = arith.constant 0 : index
    %c9_92 = arith.constant 9 : index
    %391 = vector.load %arg2[%c0_91, %c9_92] : memref<4x16xf32, #tpu.memory_space<vmem>>, vector<4x1xf32>
    %c0_93 = arith.constant 0 : index
    %c9_94 = arith.constant 9 : index
    %392 = vector.load %arg3[%c0_93, %c9_94] : memref<4x16xf32, #tpu.memory_space<vmem>>, vector<4x1xf32>
    %393 = vector.shape_cast %390 : vector<1x128xi1> to vector<1x128xi1>
    %394 = vector.broadcast %393 : vector<1x128xi1> to vector<4x128xi1>
    %395 = vector.shape_cast %391 : vector<4x1xf32> to vector<4x1xf32>
    %396 = vector.broadcast %395 : vector<4x1xf32> to vector<4x128xf32>
    %397 = vector.shape_cast %392 : vector<4x1xf32> to vector<4x1xf32>
    %398 = vector.broadcast %397 : vector<4x1xf32> to vector<4x128xf32>
    %399 = arith.select %394, %396, %398 : vector<4x128xi1>, vector<4x128xf32>
    %400 = arith.mulf %386, %399 : vector<4x128xf32>
    %cst_95 = arith.constant dense<0xFF800000> : vector<128xf32>
    %401 = vector.multi_reduction <maximumf>, %400, %cst_95 [0] : vector<4x128xf32> to vector<128xf32>
    %402 = vector.shape_cast %401 : vector<128xf32> to vector<1x128xf32>
    %cst_96 = arith.constant 1.000000e-30 : f32
    %403 = vector.broadcast %cst_96 : f32 to vector<1x128xf32>
    %404 = arith.maximumf %402, %403 : vector<1x128xf32>
    %405 = tpu.reciprocal %404 {approx = true} : vector<1x128xf32> -> vector<1x128xf32>
    %406 = vector.broadcast %405 : vector<1x128xf32> to vector<4x128xf32>
    %407 = arith.mulf %400, %406 : vector<4x128xf32>
    %408 = math.log %405 : vector<1x128xf32>
    %409 = arith.subf %322, %408 : vector<1x128xf32>
    %c9_97 = arith.constant 9 : index
    %c0_98 = arith.constant 0 : index
    %c0_99 = arith.constant 0 : index
    %410 = vector.load %arg4[%c9_97, %c0_98, %c0_99] : memref<15x4x4xf32, #tpu.memory_space<vmem>>, vector<1x4x4xf32>
    %411 = vector.shape_cast %410 : vector<1x4x4xf32> to vector<4x4xf32>
    %412 = vector.extract_strided_slice %411 {offsets = [0, 0], sizes = [4, 1], strides = [1, 1]} : vector<4x4xf32> to vector<4x1xf32>
    %413 = vector.extract_strided_slice %407 {offsets = [0, 0], sizes = [1, 128], strides = [1, 1]} : vector<4x128xf32> to vector<1x128xf32>
    %414 = vector.broadcast %412 : vector<4x1xf32> to vector<4x128xf32>
    %415 = vector.broadcast %413 : vector<1x128xf32> to vector<4x128xf32>
    %416 = arith.mulf %414, %415 : vector<4x128xf32>
    %417 = vector.extract_strided_slice %411 {offsets = [0, 1], sizes = [4, 1], strides = [1, 1]} : vector<4x4xf32> to vector<4x1xf32>
    %418 = vector.extract_strided_slice %407 {offsets = [1, 0], sizes = [1, 128], strides = [1, 1]} : vector<4x128xf32> to vector<1x128xf32>
    %419 = vector.broadcast %417 : vector<4x1xf32> to vector<4x128xf32>
    %420 = vector.broadcast %418 : vector<1x128xf32> to vector<4x128xf32>
    %421 = arith.mulf %419, %420 : vector<4x128xf32>
    %422 = arith.addf %416, %421 : vector<4x128xf32>
    %423 = vector.extract_strided_slice %411 {offsets = [0, 2], sizes = [4, 1], strides = [1, 1]} : vector<4x4xf32> to vector<4x1xf32>
    %424 = vector.extract_strided_slice %407 {offsets = [2, 0], sizes = [1, 128], strides = [1, 1]} : vector<4x128xf32> to vector<1x128xf32>
    %425 = vector.broadcast %423 : vector<4x1xf32> to vector<4x128xf32>
    %426 = vector.broadcast %424 : vector<1x128xf32> to vector<4x128xf32>
    %427 = arith.mulf %425, %426 : vector<4x128xf32>
    %428 = arith.addf %422, %427 : vector<4x128xf32>
    %429 = vector.extract_strided_slice %411 {offsets = [0, 3], sizes = [4, 1], strides = [1, 1]} : vector<4x4xf32> to vector<4x1xf32>
    %430 = vector.extract_strided_slice %407 {offsets = [3, 0], sizes = [1, 128], strides = [1, 1]} : vector<4x128xf32> to vector<1x128xf32>
    %431 = vector.broadcast %429 : vector<4x1xf32> to vector<4x128xf32>
    %432 = vector.broadcast %430 : vector<1x128xf32> to vector<4x128xf32>
    %433 = arith.mulf %431, %432 : vector<4x128xf32>
    %434 = arith.addf %428, %433 : vector<4x128xf32>
    %c10 = arith.constant 10 : index
    %c0_100 = arith.constant 0 : index
    %435 = vector.load %arg1[%c10, %c0_100] : memref<16x128xi8, #tpu.memory_space<vmem>>, vector<1x128xi8>
    %436 = arith.sitofp %435 : vector<1x128xi8> to vector<1x128xf32>
    %cst_101 = arith.constant 5.000000e-01 : f32
    %437 = vector.broadcast %cst_101 : f32 to vector<1x128xf32>
    %438 = arith.cmpf ogt, %436, %437 : vector<1x128xf32>
    %c0_102 = arith.constant 0 : index
    %c10_103 = arith.constant 10 : index
    %439 = vector.load %arg2[%c0_102, %c10_103] : memref<4x16xf32, #tpu.memory_space<vmem>>, vector<4x1xf32>
    %c0_104 = arith.constant 0 : index
    %c10_105 = arith.constant 10 : index
    %440 = vector.load %arg3[%c0_104, %c10_105] : memref<4x16xf32, #tpu.memory_space<vmem>>, vector<4x1xf32>
    %441 = vector.shape_cast %438 : vector<1x128xi1> to vector<1x128xi1>
    %442 = vector.broadcast %441 : vector<1x128xi1> to vector<4x128xi1>
    %443 = vector.shape_cast %439 : vector<4x1xf32> to vector<4x1xf32>
    %444 = vector.broadcast %443 : vector<4x1xf32> to vector<4x128xf32>
    %445 = vector.shape_cast %440 : vector<4x1xf32> to vector<4x1xf32>
    %446 = vector.broadcast %445 : vector<4x1xf32> to vector<4x128xf32>
    %447 = arith.select %442, %444, %446 : vector<4x128xi1>, vector<4x128xf32>
    %448 = arith.mulf %434, %447 : vector<4x128xf32>
    %c10_106 = arith.constant 10 : index
    %c0_107 = arith.constant 0 : index
    %c0_108 = arith.constant 0 : index
    %449 = vector.load %arg4[%c10_106, %c0_107, %c0_108] : memref<15x4x4xf32, #tpu.memory_space<vmem>>, vector<1x4x4xf32>
    %450 = vector.shape_cast %449 : vector<1x4x4xf32> to vector<4x4xf32>
    %451 = vector.extract_strided_slice %450 {offsets = [0, 0], sizes = [4, 1], strides = [1, 1]} : vector<4x4xf32> to vector<4x1xf32>
    %452 = vector.extract_strided_slice %448 {offsets = [0, 0], sizes = [1, 128], strides = [1, 1]} : vector<4x128xf32> to vector<1x128xf32>
    %453 = vector.broadcast %451 : vector<4x1xf32> to vector<4x128xf32>
    %454 = vector.broadcast %452 : vector<1x128xf32> to vector<4x128xf32>
    %455 = arith.mulf %453, %454 : vector<4x128xf32>
    %456 = vector.extract_strided_slice %450 {offsets = [0, 1], sizes = [4, 1], strides = [1, 1]} : vector<4x4xf32> to vector<4x1xf32>
    %457 = vector.extract_strided_slice %448 {offsets = [1, 0], sizes = [1, 128], strides = [1, 1]} : vector<4x128xf32> to vector<1x128xf32>
    %458 = vector.broadcast %456 : vector<4x1xf32> to vector<4x128xf32>
    %459 = vector.broadcast %457 : vector<1x128xf32> to vector<4x128xf32>
    %460 = arith.mulf %458, %459 : vector<4x128xf32>
    %461 = arith.addf %455, %460 : vector<4x128xf32>
    %462 = vector.extract_strided_slice %450 {offsets = [0, 2], sizes = [4, 1], strides = [1, 1]} : vector<4x4xf32> to vector<4x1xf32>
    %463 = vector.extract_strided_slice %448 {offsets = [2, 0], sizes = [1, 128], strides = [1, 1]} : vector<4x128xf32> to vector<1x128xf32>
    %464 = vector.broadcast %462 : vector<4x1xf32> to vector<4x128xf32>
    %465 = vector.broadcast %463 : vector<1x128xf32> to vector<4x128xf32>
    %466 = arith.mulf %464, %465 : vector<4x128xf32>
    %467 = arith.addf %461, %466 : vector<4x128xf32>
    %468 = vector.extract_strided_slice %450 {offsets = [0, 3], sizes = [4, 1], strides = [1, 1]} : vector<4x4xf32> to vector<4x1xf32>
    %469 = vector.extract_strided_slice %448 {offsets = [3, 0], sizes = [1, 128], strides = [1, 1]} : vector<4x128xf32> to vector<1x128xf32>
    %470 = vector.broadcast %468 : vector<4x1xf32> to vector<4x128xf32>
    %471 = vector.broadcast %469 : vector<1x128xf32> to vector<4x128xf32>
    %472 = arith.mulf %470, %471 : vector<4x128xf32>
    %473 = arith.addf %467, %472 : vector<4x128xf32>
    %c11 = arith.constant 11 : index
    %c0_109 = arith.constant 0 : index
    %474 = vector.load %arg1[%c11, %c0_109] : memref<16x128xi8, #tpu.memory_space<vmem>>, vector<1x128xi8>
    %475 = arith.sitofp %474 : vector<1x128xi8> to vector<1x128xf32>
    %cst_110 = arith.constant 5.000000e-01 : f32
    %476 = vector.broadcast %cst_110 : f32 to vector<1x128xf32>
    %477 = arith.cmpf ogt, %475, %476 : vector<1x128xf32>
    %c0_111 = arith.constant 0 : index
    %c11_112 = arith.constant 11 : index
    %478 = vector.load %arg2[%c0_111, %c11_112] : memref<4x16xf32, #tpu.memory_space<vmem>>, vector<4x1xf32>
    %c0_113 = arith.constant 0 : index
    %c11_114 = arith.constant 11 : index
    %479 = vector.load %arg3[%c0_113, %c11_114] : memref<4x16xf32, #tpu.memory_space<vmem>>, vector<4x1xf32>
    %480 = vector.shape_cast %477 : vector<1x128xi1> to vector<1x128xi1>
    %481 = vector.broadcast %480 : vector<1x128xi1> to vector<4x128xi1>
    %482 = vector.shape_cast %478 : vector<4x1xf32> to vector<4x1xf32>
    %483 = vector.broadcast %482 : vector<4x1xf32> to vector<4x128xf32>
    %484 = vector.shape_cast %479 : vector<4x1xf32> to vector<4x1xf32>
    %485 = vector.broadcast %484 : vector<4x1xf32> to vector<4x128xf32>
    %486 = arith.select %481, %483, %485 : vector<4x128xi1>, vector<4x128xf32>
    %487 = arith.mulf %473, %486 : vector<4x128xf32>
    %cst_115 = arith.constant dense<0xFF800000> : vector<128xf32>
    %488 = vector.multi_reduction <maximumf>, %487, %cst_115 [0] : vector<4x128xf32> to vector<128xf32>
    %489 = vector.shape_cast %488 : vector<128xf32> to vector<1x128xf32>
    %cst_116 = arith.constant 1.000000e-30 : f32
    %490 = vector.broadcast %cst_116 : f32 to vector<1x128xf32>
    %491 = arith.maximumf %489, %490 : vector<1x128xf32>
    %492 = tpu.reciprocal %491 {approx = true} : vector<1x128xf32> -> vector<1x128xf32>
    %493 = vector.broadcast %492 : vector<1x128xf32> to vector<4x128xf32>
    %494 = arith.mulf %487, %493 : vector<4x128xf32>
    %495 = math.log %492 : vector<1x128xf32>
    %496 = arith.subf %409, %495 : vector<1x128xf32>
    %c11_117 = arith.constant 11 : index
    %c0_118 = arith.constant 0 : index
    %c0_119 = arith.constant 0 : index
    %497 = vector.load %arg4[%c11_117, %c0_118, %c0_119] : memref<15x4x4xf32, #tpu.memory_space<vmem>>, vector<1x4x4xf32>
    %498 = vector.shape_cast %497 : vector<1x4x4xf32> to vector<4x4xf32>
    %499 = vector.extract_strided_slice %498 {offsets = [0, 0], sizes = [4, 1], strides = [1, 1]} : vector<4x4xf32> to vector<4x1xf32>
    %500 = vector.extract_strided_slice %494 {offsets = [0, 0], sizes = [1, 128], strides = [1, 1]} : vector<4x128xf32> to vector<1x128xf32>
    %501 = vector.broadcast %499 : vector<4x1xf32> to vector<4x128xf32>
    %502 = vector.broadcast %500 : vector<1x128xf32> to vector<4x128xf32>
    %503 = arith.mulf %501, %502 : vector<4x128xf32>
    %504 = vector.extract_strided_slice %498 {offsets = [0, 1], sizes = [4, 1], strides = [1, 1]} : vector<4x4xf32> to vector<4x1xf32>
    %505 = vector.extract_strided_slice %494 {offsets = [1, 0], sizes = [1, 128], strides = [1, 1]} : vector<4x128xf32> to vector<1x128xf32>
    %506 = vector.broadcast %504 : vector<4x1xf32> to vector<4x128xf32>
    %507 = vector.broadcast %505 : vector<1x128xf32> to vector<4x128xf32>
    %508 = arith.mulf %506, %507 : vector<4x128xf32>
    %509 = arith.addf %503, %508 : vector<4x128xf32>
    %510 = vector.extract_strided_slice %498 {offsets = [0, 2], sizes = [4, 1], strides = [1, 1]} : vector<4x4xf32> to vector<4x1xf32>
    %511 = vector.extract_strided_slice %494 {offsets = [2, 0], sizes = [1, 128], strides = [1, 1]} : vector<4x128xf32> to vector<1x128xf32>
    %512 = vector.broadcast %510 : vector<4x1xf32> to vector<4x128xf32>
    %513 = vector.broadcast %511 : vector<1x128xf32> to vector<4x128xf32>
    %514 = arith.mulf %512, %513 : vector<4x128xf32>
    %515 = arith.addf %509, %514 : vector<4x128xf32>
    %516 = vector.extract_strided_slice %498 {offsets = [0, 3], sizes = [4, 1], strides = [1, 1]} : vector<4x4xf32> to vector<4x1xf32>
    %517 = vector.extract_strided_slice %494 {offsets = [3, 0], sizes = [1, 128], strides = [1, 1]} : vector<4x128xf32> to vector<1x128xf32>
    %518 = vector.broadcast %516 : vector<4x1xf32> to vector<4x128xf32>
    %519 = vector.broadcast %517 : vector<1x128xf32> to vector<4x128xf32>
    %520 = arith.mulf %518, %519 : vector<4x128xf32>
    %521 = arith.addf %515, %520 : vector<4x128xf32>
    %c12 = arith.constant 12 : index
    %c0_120 = arith.constant 0 : index
    %522 = vector.load %arg1[%c12, %c0_120] : memref<16x128xi8, #tpu.memory_space<vmem>>, vector<1x128xi8>
    %523 = arith.sitofp %522 : vector<1x128xi8> to vector<1x128xf32>
    %cst_121 = arith.constant 5.000000e-01 : f32
    %524 = vector.broadcast %cst_121 : f32 to vector<1x128xf32>
    %525 = arith.cmpf ogt, %523, %524 : vector<1x128xf32>
    %c0_122 = arith.constant 0 : index
    %c12_123 = arith.constant 12 : index
    %526 = vector.load %arg2[%c0_122, %c12_123] : memref<4x16xf32, #tpu.memory_space<vmem>>, vector<4x1xf32>
    %c0_124 = arith.constant 0 : index
    %c12_125 = arith.constant 12 : index
    %527 = vector.load %arg3[%c0_124, %c12_125] : memref<4x16xf32, #tpu.memory_space<vmem>>, vector<4x1xf32>
    %528 = vector.shape_cast %525 : vector<1x128xi1> to vector<1x128xi1>
    %529 = vector.broadcast %528 : vector<1x128xi1> to vector<4x128xi1>
    %530 = vector.shape_cast %526 : vector<4x1xf32> to vector<4x1xf32>
    %531 = vector.broadcast %530 : vector<4x1xf32> to vector<4x128xf32>
    %532 = vector.shape_cast %527 : vector<4x1xf32> to vector<4x1xf32>
    %533 = vector.broadcast %532 : vector<4x1xf32> to vector<4x128xf32>
    %534 = arith.select %529, %531, %533 : vector<4x128xi1>, vector<4x128xf32>
    %535 = arith.mulf %521, %534 : vector<4x128xf32>
    %c12_126 = arith.constant 12 : index
    %c0_127 = arith.constant 0 : index
    %c0_128 = arith.constant 0 : index
    %536 = vector.load %arg4[%c12_126, %c0_127, %c0_128] : memref<15x4x4xf32, #tpu.memory_space<vmem>>, vector<1x4x4xf32>
    %537 = vector.shape_cast %536 : vector<1x4x4xf32> to vector<4x4xf32>
    %538 = vector.extract_strided_slice %537 {offsets = [0, 0], sizes = [4, 1], strides = [1, 1]} : vector<4x4xf32> to vector<4x1xf32>
    %539 = vector.extract_strided_slice %535 {offsets = [0, 0], sizes = [1, 128], strides = [1, 1]} : vector<4x128xf32> to vector<1x128xf32>
    %540 = vector.broadcast %538 : vector<4x1xf32> to vector<4x128xf32>
    %541 = vector.broadcast %539 : vector<1x128xf32> to vector<4x128xf32>
    %542 = arith.mulf %540, %541 : vector<4x128xf32>
    %543 = vector.extract_strided_slice %537 {offsets = [0, 1], sizes = [4, 1], strides = [1, 1]} : vector<4x4xf32> to vector<4x1xf32>
    %544 = vector.extract_strided_slice %535 {offsets = [1, 0], sizes = [1, 128], strides = [1, 1]} : vector<4x128xf32> to vector<1x128xf32>
    %545 = vector.broadcast %543 : vector<4x1xf32> to vector<4x128xf32>
    %546 = vector.broadcast %544 : vector<1x128xf32> to vector<4x128xf32>
    %547 = arith.mulf %545, %546 : vector<4x128xf32>
    %548 = arith.addf %542, %547 : vector<4x128xf32>
    %549 = vector.extract_strided_slice %537 {offsets = [0, 2], sizes = [4, 1], strides = [1, 1]} : vector<4x4xf32> to vector<4x1xf32>
    %550 = vector.extract_strided_slice %535 {offsets = [2, 0], sizes = [1, 128], strides = [1, 1]} : vector<4x128xf32> to vector<1x128xf32>
    %551 = vector.broadcast %549 : vector<4x1xf32> to vector<4x128xf32>
    %552 = vector.broadcast %550 : vector<1x128xf32> to vector<4x128xf32>
    %553 = arith.mulf %551, %552 : vector<4x128xf32>
    %554 = arith.addf %548, %553 : vector<4x128xf32>
    %555 = vector.extract_strided_slice %537 {offsets = [0, 3], sizes = [4, 1], strides = [1, 1]} : vector<4x4xf32> to vector<4x1xf32>
    %556 = vector.extract_strided_slice %535 {offsets = [3, 0], sizes = [1, 128], strides = [1, 1]} : vector<4x128xf32> to vector<1x128xf32>
    %557 = vector.broadcast %555 : vector<4x1xf32> to vector<4x128xf32>
    %558 = vector.broadcast %556 : vector<1x128xf32> to vector<4x128xf32>
    %559 = arith.mulf %557, %558 : vector<4x128xf32>
    %560 = arith.addf %554, %559 : vector<4x128xf32>
    %c13 = arith.constant 13 : index
    %c0_129 = arith.constant 0 : index
    %561 = vector.load %arg1[%c13, %c0_129] : memref<16x128xi8, #tpu.memory_space<vmem>>, vector<1x128xi8>
    %562 = arith.sitofp %561 : vector<1x128xi8> to vector<1x128xf32>
    %cst_130 = arith.constant 5.000000e-01 : f32
    %563 = vector.broadcast %cst_130 : f32 to vector<1x128xf32>
    %564 = arith.cmpf ogt, %562, %563 : vector<1x128xf32>
    %c0_131 = arith.constant 0 : index
    %c13_132 = arith.constant 13 : index
    %565 = vector.load %arg2[%c0_131, %c13_132] : memref<4x16xf32, #tpu.memory_space<vmem>>, vector<4x1xf32>
    %c0_133 = arith.constant 0 : index
    %c13_134 = arith.constant 13 : index
    %566 = vector.load %arg3[%c0_133, %c13_134] : memref<4x16xf32, #tpu.memory_space<vmem>>, vector<4x1xf32>
    %567 = vector.shape_cast %564 : vector<1x128xi1> to vector<1x128xi1>
    %568 = vector.broadcast %567 : vector<1x128xi1> to vector<4x128xi1>
    %569 = vector.shape_cast %565 : vector<4x1xf32> to vector<4x1xf32>
    %570 = vector.broadcast %569 : vector<4x1xf32> to vector<4x128xf32>
    %571 = vector.shape_cast %566 : vector<4x1xf32> to vector<4x1xf32>
    %572 = vector.broadcast %571 : vector<4x1xf32> to vector<4x128xf32>
    %573 = arith.select %568, %570, %572 : vector<4x128xi1>, vector<4x128xf32>
    %574 = arith.mulf %560, %573 : vector<4x128xf32>
    %cst_135 = arith.constant dense<0xFF800000> : vector<128xf32>
    %575 = vector.multi_reduction <maximumf>, %574, %cst_135 [0] : vector<4x128xf32> to vector<128xf32>
    %576 = vector.shape_cast %575 : vector<128xf32> to vector<1x128xf32>
    %cst_136 = arith.constant 1.000000e-30 : f32
    %577 = vector.broadcast %cst_136 : f32 to vector<1x128xf32>
    %578 = arith.maximumf %576, %577 : vector<1x128xf32>
    %579 = tpu.reciprocal %578 {approx = true} : vector<1x128xf32> -> vector<1x128xf32>
    %580 = vector.broadcast %579 : vector<1x128xf32> to vector<4x128xf32>
    %581 = arith.mulf %574, %580 : vector<4x128xf32>
    %582 = math.log %579 : vector<1x128xf32>
    %583 = arith.subf %496, %582 : vector<1x128xf32>
    %c13_137 = arith.constant 13 : index
    %c0_138 = arith.constant 0 : index
    %c0_139 = arith.constant 0 : index
    %584 = vector.load %arg4[%c13_137, %c0_138, %c0_139] : memref<15x4x4xf32, #tpu.memory_space<vmem>>, vector<1x4x4xf32>
    %585 = vector.shape_cast %584 : vector<1x4x4xf32> to vector<4x4xf32>
    %586 = vector.extract_strided_slice %585 {offsets = [0, 0], sizes = [4, 1], strides = [1, 1]} : vector<4x4xf32> to vector<4x1xf32>
    %587 = vector.extract_strided_slice %581 {offsets = [0, 0], sizes = [1, 128], strides = [1, 1]} : vector<4x128xf32> to vector<1x128xf32>
    %588 = vector.broadcast %586 : vector<4x1xf32> to vector<4x128xf32>
    %589 = vector.broadcast %587 : vector<1x128xf32> to vector<4x128xf32>
    %590 = arith.mulf %588, %589 : vector<4x128xf32>
    %591 = vector.extract_strided_slice %585 {offsets = [0, 1], sizes = [4, 1], strides = [1, 1]} : vector<4x4xf32> to vector<4x1xf32>
    %592 = vector.extract_strided_slice %581 {offsets = [1, 0], sizes = [1, 128], strides = [1, 1]} : vector<4x128xf32> to vector<1x128xf32>
    %593 = vector.broadcast %591 : vector<4x1xf32> to vector<4x128xf32>
    %594 = vector.broadcast %592 : vector<1x128xf32> to vector<4x128xf32>
    %595 = arith.mulf %593, %594 : vector<4x128xf32>
    %596 = arith.addf %590, %595 : vector<4x128xf32>
    %597 = vector.extract_strided_slice %585 {offsets = [0, 2], sizes = [4, 1], strides = [1, 1]} : vector<4x4xf32> to vector<4x1xf32>
    %598 = vector.extract_strided_slice %581 {offsets = [2, 0], sizes = [1, 128], strides = [1, 1]} : vector<4x128xf32> to vector<1x128xf32>
    %599 = vector.broadcast %597 : vector<4x1xf32> to vector<4x128xf32>
    %600 = vector.broadcast %598 : vector<1x128xf32> to vector<4x128xf32>
    %601 = arith.mulf %599, %600 : vector<4x128xf32>
    %602 = arith.addf %596, %601 : vector<4x128xf32>
    %603 = vector.extract_strided_slice %585 {offsets = [0, 3], sizes = [4, 1], strides = [1, 1]} : vector<4x4xf32> to vector<4x1xf32>
    %604 = vector.extract_strided_slice %581 {offsets = [3, 0], sizes = [1, 128], strides = [1, 1]} : vector<4x128xf32> to vector<1x128xf32>
    %605 = vector.broadcast %603 : vector<4x1xf32> to vector<4x128xf32>
    %606 = vector.broadcast %604 : vector<1x128xf32> to vector<4x128xf32>
    %607 = arith.mulf %605, %606 : vector<4x128xf32>
    %608 = arith.addf %602, %607 : vector<4x128xf32>
    %c14 = arith.constant 14 : index
    %c0_140 = arith.constant 0 : index
    %609 = vector.load %arg1[%c14, %c0_140] : memref<16x128xi8, #tpu.memory_space<vmem>>, vector<1x128xi8>
    %610 = arith.sitofp %609 : vector<1x128xi8> to vector<1x128xf32>
    %cst_141 = arith.constant 5.000000e-01 : f32
    %611 = vector.broadcast %cst_141 : f32 to vector<1x128xf32>
    %612 = arith.cmpf ogt, %610, %611 : vector<1x128xf32>
    %c0_142 = arith.constant 0 : index
    %c14_143 = arith.constant 14 : index
    %613 = vector.load %arg2[%c0_142, %c14_143] : memref<4x16xf32, #tpu.memory_space<vmem>>, vector<4x1xf32>
    %c0_144 = arith.constant 0 : index
    %c14_145 = arith.constant 14 : index
    %614 = vector.load %arg3[%c0_144, %c14_145] : memref<4x16xf32, #tpu.memory_space<vmem>>, vector<4x1xf32>
    %615 = vector.shape_cast %612 : vector<1x128xi1> to vector<1x128xi1>
    %616 = vector.broadcast %615 : vector<1x128xi1> to vector<4x128xi1>
    %617 = vector.shape_cast %613 : vector<4x1xf32> to vector<4x1xf32>
    %618 = vector.broadcast %617 : vector<4x1xf32> to vector<4x128xf32>
    %619 = vector.shape_cast %614 : vector<4x1xf32> to vector<4x1xf32>
    %620 = vector.broadcast %619 : vector<4x1xf32> to vector<4x128xf32>
    %621 = arith.select %616, %618, %620 : vector<4x128xi1>, vector<4x128xf32>
    %622 = arith.mulf %608, %621 : vector<4x128xf32>
    %c14_146 = arith.constant 14 : index
    %c0_147 = arith.constant 0 : index
    %c0_148 = arith.constant 0 : index
    %623 = vector.load %arg4[%c14_146, %c0_147, %c0_148] : memref<15x4x4xf32, #tpu.memory_space<vmem>>, vector<1x4x4xf32>
    %624 = vector.shape_cast %623 : vector<1x4x4xf32> to vector<4x4xf32>
    %625 = vector.extract_strided_slice %624 {offsets = [0, 0], sizes = [4, 1], strides = [1, 1]} : vector<4x4xf32> to vector<4x1xf32>
    %626 = vector.extract_strided_slice %622 {offsets = [0, 0], sizes = [1, 128], strides = [1, 1]} : vector<4x128xf32> to vector<1x128xf32>
    %627 = vector.broadcast %625 : vector<4x1xf32> to vector<4x128xf32>
    %628 = vector.broadcast %626 : vector<1x128xf32> to vector<4x128xf32>
    %629 = arith.mulf %627, %628 : vector<4x128xf32>
    %630 = vector.extract_strided_slice %624 {offsets = [0, 1], sizes = [4, 1], strides = [1, 1]} : vector<4x4xf32> to vector<4x1xf32>
    %631 = vector.extract_strided_slice %622 {offsets = [1, 0], sizes = [1, 128], strides = [1, 1]} : vector<4x128xf32> to vector<1x128xf32>
    %632 = vector.broadcast %630 : vector<4x1xf32> to vector<4x128xf32>
    %633 = vector.broadcast %631 : vector<1x128xf32> to vector<4x128xf32>
    %634 = arith.mulf %632, %633 : vector<4x128xf32>
    %635 = arith.addf %629, %634 : vector<4x128xf32>
    %636 = vector.extract_strided_slice %624 {offsets = [0, 2], sizes = [4, 1], strides = [1, 1]} : vector<4x4xf32> to vector<4x1xf32>
    %637 = vector.extract_strided_slice %622 {offsets = [2, 0], sizes = [1, 128], strides = [1, 1]} : vector<4x128xf32> to vector<1x128xf32>
    %638 = vector.broadcast %636 : vector<4x1xf32> to vector<4x128xf32>
    %639 = vector.broadcast %637 : vector<1x128xf32> to vector<4x128xf32>
    %640 = arith.mulf %638, %639 : vector<4x128xf32>
    %641 = arith.addf %635, %640 : vector<4x128xf32>
    %642 = vector.extract_strided_slice %624 {offsets = [0, 3], sizes = [4, 1], strides = [1, 1]} : vector<4x4xf32> to vector<4x1xf32>
    %643 = vector.extract_strided_slice %622 {offsets = [3, 0], sizes = [1, 128], strides = [1, 1]} : vector<4x128xf32> to vector<1x128xf32>
    %644 = vector.broadcast %642 : vector<4x1xf32> to vector<4x128xf32>
    %645 = vector.broadcast %643 : vector<1x128xf32> to vector<4x128xf32>
    %646 = arith.mulf %644, %645 : vector<4x128xf32>
    %647 = arith.addf %641, %646 : vector<4x128xf32>
    %c15 = arith.constant 15 : index
    %c0_149 = arith.constant 0 : index
    %648 = vector.load %arg1[%c15, %c0_149] : memref<16x128xi8, #tpu.memory_space<vmem>>, vector<1x128xi8>
    %649 = arith.sitofp %648 : vector<1x128xi8> to vector<1x128xf32>
    %cst_150 = arith.constant 5.000000e-01 : f32
    %650 = vector.broadcast %cst_150 : f32 to vector<1x128xf32>
    %651 = arith.cmpf ogt, %649, %650 : vector<1x128xf32>
    %c0_151 = arith.constant 0 : index
    %c15_152 = arith.constant 15 : index
    %652 = vector.load %arg2[%c0_151, %c15_152] : memref<4x16xf32, #tpu.memory_space<vmem>>, vector<4x1xf32>
    %c0_153 = arith.constant 0 : index
    %c15_154 = arith.constant 15 : index
    %653 = vector.load %arg3[%c0_153, %c15_154] : memref<4x16xf32, #tpu.memory_space<vmem>>, vector<4x1xf32>
    %654 = vector.shape_cast %651 : vector<1x128xi1> to vector<1x128xi1>
    %655 = vector.broadcast %654 : vector<1x128xi1> to vector<4x128xi1>
    %656 = vector.shape_cast %652 : vector<4x1xf32> to vector<4x1xf32>
    %657 = vector.broadcast %656 : vector<4x1xf32> to vector<4x128xf32>
    %658 = vector.shape_cast %653 : vector<4x1xf32> to vector<4x1xf32>
    %659 = vector.broadcast %658 : vector<4x1xf32> to vector<4x128xf32>
    %660 = arith.select %655, %657, %659 : vector<4x128xi1>, vector<4x128xf32>
    %661 = arith.mulf %647, %660 : vector<4x128xf32>
    %cst_155 = arith.constant dense<0xFF800000> : vector<128xf32>
    %662 = vector.multi_reduction <maximumf>, %661, %cst_155 [0] : vector<4x128xf32> to vector<128xf32>
    %663 = vector.shape_cast %662 : vector<128xf32> to vector<1x128xf32>
    %cst_156 = arith.constant 1.000000e-30 : f32
    %664 = vector.broadcast %cst_156 : f32 to vector<1x128xf32>
    %665 = arith.maximumf %663, %664 : vector<1x128xf32>
    %666 = tpu.reciprocal %665 {approx = true} : vector<1x128xf32> -> vector<1x128xf32>
    %667 = vector.broadcast %666 : vector<1x128xf32> to vector<4x128xf32>
    %668 = arith.mulf %661, %667 : vector<4x128xf32>
    %669 = math.log %666 : vector<1x128xf32>
    %670 = arith.subf %583, %669 : vector<1x128xf32>
    %cst_157 = arith.constant dense<0.000000e+00> : vector<128xf32>
    %671 = vector.multi_reduction <add>, %668, %cst_157 [0] : vector<4x128xf32> to vector<128xf32>
    %672 = vector.shape_cast %671 : vector<128xf32> to vector<1x128xf32>
    %673 = math.log %672 : vector<1x128xf32>
    %674 = arith.addf %670, %673 : vector<1x128xf32>
    %c0_158 = arith.constant 0 : index
    %c0_159 = arith.constant 0 : index
    %675 = vector.load %arg5[%c0_158, %c0_159] : memref<1x128xf32, #tpu.memory_space<vmem>>, vector<1x128xf32>
    tpu.vector_store %arg5[%c0_158, %c0_159], %674 {strides = array<i32>} : memref<1x128xf32, #tpu.memory_space<vmem>>, vector<1x128xf32>,
    return
  }
  func.func @transform_0(%arg0: i32) -> (i32, i32) {
    %c0_i32 = arith.constant 0 : i32
    %c0_i32_0 = arith.constant 0 : i32
    return %c0_i32, %arg0 : i32, i32
  }
  func.func @transform_1(%arg0: i32) -> (i32, i32) {
    %c0_i32 = arith.constant 0 : i32
    %c0_i32_0 = arith.constant 0 : i32
    %c0_i32_1 = arith.constant 0 : i32
    return %c0_i32, %c0_i32_0 : i32, i32
  }
  func.func @transform_2(%arg0: i32) -> (i32, i32) {
    %c0_i32 = arith.constant 0 : i32
    %c0_i32_0 = arith.constant 0 : i32
    %c0_i32_1 = arith.constant 0 : i32
    return %c0_i32, %c0_i32_0 : i32, i32
  }
  func.func @transform_3(%arg0: i32) -> (i32, i32, i32) {
    %c0_i32 = arith.constant 0 : i32
    %c0_i32_0 = arith.constant 0 : i32
    %c0_i32_1 = arith.constant 0 : i32
    %c0_i32_2 = arith.constant 0 : i32
    return %c0_i32, %c0_i32_0, %c0_i32_1 : i32, i32, i32
  }
  func.func @transform_4(%arg0: i32) -> (i32, i32) {
    %c0_i32 = arith.constant 0 : i32
    %c0_i32_0 = arith.constant 0 : i32
    return %c0_i32, %arg0 : i32, i32
  }
}

</mosaic_0001>

<bundles_post_ra>
// kernel: tt_forward.1
= control target key start
LH: loop header
LB: loop body
LE: loop exit
PB: predicated region body
PF: predicated region fallthrough
CT: control target
= control target key end

     0   :  { %s1544_s15 = smov 0   ;;  %s1546_s16 = smov 0   ;;  %s1989_s0 = inlined_call_operand.vmem [shape: s8[16,256], index: 0, kind: input, shape index: {}]   ;;  %s1990_s1 = inlined_call_operand.vmem [shape: f32[4,16], index: 1, kind: input, shape index: {}]   ;;  %s1991_s2 = inlined_call_operand.vmem [shape: f32[4,16], index: 2, kind: input, shape index: {}]   ;;  %s1992_s3 = inlined_call_operand.vmem [shape: f32[15,4,4], index: 3, kind: input, shape index: {}]   ;;  %s1993_s4 = inlined_call_operand.vmem [shape: f32[1,256], index: 4, kind: output, shape index: {}]  }
   0x1   :  { %s1548_s17 = smov 0  }
   0x2 LB: > { %s1292_s18 = sadd.s32 4294967295, %s1501_s17   ;;  %s1561_s19 = sadd.s32 1, %s1501_s17   ;;  %s1501_s17 = sphi %s1548_s17, %s1996_s17   ;;  %s1497_s16 = sphi %s1546_s16, %s1995_s16   ;;  %s1493_s15 = sphi %s1544_s15, %s1994_s15  }
   0x3   : > { %s18_s20 = ssub.s32 %s1501_s17, %s1561_s19  ;;  %s21_s21 = sadd.s32 1, %s1497_s16 }
   0x4   : > { %p19_p0 = scmp.eq.s32.totalorder %s18_s20, 0  ;;  %p28_p1 = scmp.ne.s32.totalorder %s1497_s16, %s1493_s15 }
   0x5   : > { %p29_p2 = scmp.eq.s32.totalorder %s1501_s17, 0  ;;  %p1295_p4 = scmp.ge.s32.totalorder %s1501_s17, 2 }
   0x6   : > { %s1570_s22 = scalar_select %p19_p0, %s1497_s16, %s21_s21  }
   0x7   : > { %p30_p3 = por %p29_p2, %p28_p1  ;;  %152 = sbr.rel (%p1295_p4) target bundleno = 21 (0x15), region = 28 }
   0xe   : > { %155 = sbr.rel (!%p30_p3) target bundleno = 21 (0x15), region = 32  ;;  %s157_s23 = sand.u32 (%p30_p3), 1, %s1497_s16  }
   0xf   : > { %s1297_s24 = sshll.u32 (%p30_p3), %s1501_s17, 1  ;;  %s1296_s25 = sshll.u32 (%p30_p3), %s157_s23, 2 }
  0x10   : > { %s161_s28 = scalar_lea.vmem (%p30_p3), %s1989_s0, %s1297_s24  ;;  %s159_s29 = scalar_lea.vmem (%p30_p3), [#allocation2], %s1296_s25 }
  0x11   : > { %v177_v0 = vld [vmem:[%s161_s28] sm:$0x3] (%p30_p3)  ;;  %v179_v1 = vld [vmem:[%s161_s28 + $0x4] sm:$0x3] (%p30_p3) }
  0x12   : > { %178 = vst [vmem:[%s159_s29] sm:$0x3] (%p30_p3), %v177_v0  ;;  %180 = vst [vmem:[%s159_s29 + $0x2] sm:$0x3] (%p30_p3), %v179_v1 }
  0x15 PF: > { %p1298_p5 = scmp.ge.s32.totalorder %s1501_s17, 1  ;;  %p198_p6 = scmp.lt.s32.totalorder %s1501_s17, 3 }
  0x17   : > { %p199_p7 = pnand %p1298_p5, %p198_p6 }
  0x18   : > { %v254_v2 = vld [vmem:[%s1992_s3] sm:$0xf] (!%p199_p7)  ;;  %v1503_v4 = vmov (!%p199_p7), 0   ;;  %v1504_v6 = vmov (!%p199_p7), 1   ;;  %v1505_v7 = vmov (!%p199_p7), 2   ;;  %v1506_v8 = vmov (!%p199_p7), 3  }
  0x19   : > { %202 = sbr.rel (%p199_p7) target bundleno = 593 (0x251), region = 66  ;;  %v1586_v3 = vld [vmem:[%s1990_s1] sm:$0xf] (!%p199_p7)  ;;  %1357 = vset.pattern.permute.xlu1 (!%p199_p7), %v1503_v4  ;;  %1356 = vset.pattern.permute.xlu0 (!%p199_p7), %v1503_v4  ;;  %v1300_v9 = vld [vmem:[%s1992_s3 + $0x4] sm:$0xf] (!%p199_p7)  ;;  %v1507_v12 = vmov (!%p199_p7), 4   ;;  %v238_v26 = vlaneseq (!%p199_p7) }
  0x1a   : > { %257 = vperm.xlu1 (!%p199_p7), %1357, %v254_v2   ;;  %245 = vperm.xlu0 (!%p199_p7), %1356, %v1586_v3   ;;  %v1594_v5 = vld [vmem:[%s1991_s2] sm:$0xf] (!%p199_p7)  ;;  %v1301_v10 = vld [vmem:[%s1992_s3 + $0x8] sm:$0xf] (!%p199_p7)  ;;  %v1302_v11 = vld [vmem:[%s1992_s3 + $0xc] sm:$0xf] (!%p199_p7) }
  0x1b   : > { %v1303_v13 = vld [vmem:[%s1992_s3 + $0x10] sm:$0xf] (!%p199_p7)  ;;  %v1508_v14 = vmov (!%p199_p7), 5   ;;  %v1304_v15 = vld [vmem:[%s1992_s3 + $0x14] sm:$0xf] (!%p199_p7)  ;;  %v1509_v16 = vmov (!%p199_p7), 6  }
  0x1c   : > { %v1644_v17 = vld [vmem:[%s1992_s3 + $0x18] sm:$0xf] (!%p199_p7)  ;;  %v1510_v18 = vmov (!%p199_p7), 7   ;;  %v1655_v19 = vld [vmem:[%s1992_s3 + $0x1c] sm:$0xf] (!%p199_p7)  ;;  %v1511_v20 = vmov (!%p199_p7), 8  }
  0x1d   : > { %v1666_v21 = vld [vmem:[%s1992_s3 + $0x20] sm:$0xf] (!%p199_p7)  ;;  %v1512_v22 = vmov (!%p199_p7), 9   ;;  %s205_s6 = sand.u32 (!%p199_p7), 1, %s1493_s15   ;;  %v1685_v24 = vld [vmem:[%s1992_s3 + $0x24] sm:$0xf] (!%p199_p7) }
  0x1e   : > { %1358 = vset.pattern.permute.xlu1 (!%p199_p7), %v1504_v6  ;;  %250 = vperm.xlu0 (!%p199_p7), %1356, %v1594_v5   ;;  %s1299_s7 = sshll.u32 (!%p199_p7), %s205_s6, 2  ;;  %v1689_v28 = vshrl.u32 (!%p199_p7), %v238_v26, 7  ;;  %v1513_v31 = vmov (!%p199_p7), 10   ;;  %v1713_v36 = vld [vmem:[%s1992_s3 + $0x28] sm:$0xf] (!%p199_p7)  ;;  %vm310_vm3 = vcmask (!%p199_p7), 1043456  }
  0x1f   : > { %266 = vperm.xlu1 (!%p199_p7), %1358, %v254_v2   ;;  %s1678_s8 = scalar_lea.vmem (!%p199_p7), [#allocation2], %s1299_s7  ;;  %v1514_v61 = vmov (!%p199_p7), 11   ;;  %p228_p8 = scmp.lt.s32.totalorder (!%p199_p7), %s1292_s18, 1 }
  0x20   : > { %v231_v23 = vld [vmem:[%s1678_s8] sm:$0x1]  ;;  %v1694_v29 = vsub.s32 0, %v1689_v28  ;;  %v1707_v35 = vsub.s32 1, %v1689_v28  ;;  %v1718_v38 = vsub.s32 2, %v1689_v28  ;;  %v1721_v41 = vsub.s32 3, %v1689_v28 }
  0x21   : > { %v232_v25 = vunpack.c.0.s8 %v231_v23  ;;  %s1998_s18 = smov (!%p228_p8, %s1292_s18), 1 }
  0x22   : > { %1359 = vset.pattern.permute.xlu0 %v1505_v7  ;;  %s230_s28 = scalar_lea.vmem %s1993_s4, %s1998_s18 }
  0x23   : > { %1360 = vset.pattern.permute.xlu1 %v1506_v8  ;;  %276 = vperm.xlu0 %1359, %v254_v2   ;;  %v233_v27 = vcvt.s32.f32 %v232_v25 }
  0x24   : > { %286 = vperm.xlu1 %1360, %v254_v2  }
  0x25   : > { %vm234_vm0 = vcmp.gt.f32.partialorder %v233_v27, 0.5 }
  0x26   : > { %v1697_v30 = vsel %vm234_vm0, 1, %v1503_v4 }
  0x27   : > { %1362 = vset.pattern.permute.xlu0 %v1504_v6  ;;  %v241_v32 = vrot.slane %v1697_v30, %v1694_v29  ;;  %v298_v49 = vrot.slane %v1697_v30, %v1707_v35 }
  0x28   : > { %1361 = vset.pattern.permute.xlu1 %v1504_v6  ;;  %305 = vperm.xlu0 %1362, %v1594_v5  }
  0x29   : > { %301 = vperm.xlu1 %1361, %v1586_v3   ;;  %vm242_vm1 = vcmp.eq.s32.totalorder %v241_v32, 1  ;;  %vm299_vm2 = vcmp.eq.s32.totalorder %v298_v49, 1  ;;  %v369_v32 = vrot.slane %v1697_v30, %v1718_v38 }
  0x2b   : > { %vm370_vm4 = vcmp.eq.s32.totalorder %v369_v32, 1 }
  0x2c   : > { %1365 = vset.pattern.permute.xlu0 %v1505_v7 }
  0x2d   : > { %1363 = vset.pattern.permute.xlu1 %v1503_v4  ;;  %347 = vperm.xlu0 %1365, %v1300_v9  }
  0x2e   : > { %328 = vperm.xlu1 %1363, %v1300_v9  }
  0x31   : > { %376 = vperm.xlu0 %1365, %v1594_v5  }
  0x32   : > { %1364 = vset.pattern.permute.xlu1 %v1504_v6 }
  0x33   : > { %337 = vperm.xlu1 %1364, %v1300_v9  }
  0x35   : > { %1369 = vset.pattern.permute.xlu0 %v1504_v6 }
  0x36   : > { %394 = vperm.xlu0 %1369, %v1301_v10  }
  0x37   : > { %1366 = vset.pattern.permute.xlu1 %v1506_v8 }
  0x38   : > { %357 = vperm.xlu1 %1366, %v1300_v9  }
  0x3a   : > { %1372 = vset.pattern.permute.xlu0 %v1506_v8 }
  0x3b   : > { %429 = vperm.xlu0 %1372, %v1586_v3  }
  0x3c   : > { %1367 = vset.pattern.permute.xlu1 %v1505_v7 }
  0x3d   : > { %372 = vperm.xlu1 %1367, %v1586_v3  }
  0x3f   : > { %1374 = vset.pattern.permute.xlu0 %v1504_v6 }
  0x40   : > { %464 = vperm.xlu0 %1374, %v1302_v11  }
  0x41   : > { %1368 = vset.pattern.permute.xlu1 %v1503_v4 }
  0x42   : > { %385 = vperm.xlu1 %1368, %v1301_v10  }
  0x44   : > { %1377 = vset.pattern.permute.xlu0 %v1507_v12 }
  0x45   : > { %504 = vperm.xlu0 %1377, %v1586_v3  }
  0x46   : > { %1370 = vset.pattern.permute.xlu1 %v1505_v7 }
  0x47   : > { %404 = vperm.xlu1 %1370, %v1301_v10  }
  0x49   : > { %1380 = vset.pattern.permute.xlu0 %v1504_v6 }
  0x4a   : > { %526 = vperm.xlu0 %1380, %v1303_v13  }
  0x4b   : > { %1371 = vset.pattern.permute.xlu1 %v1506_v8 }
  0x4c   : > { %414 = vperm.xlu1 %1371, %v1301_v10  }
  0x4e   : > { %1383 = vset.pattern.permute.xlu0 %v1508_v14 }
  0x4f   : > { %561 = vperm.xlu0 %1383, %v1586_v3  }
  0x50   : > { %433 = vperm.xlu1 %1371, %v1594_v5  }
  0x53   : > { %1386 = vset.pattern.permute.xlu0 %v1504_v6 }
  0x54   : > { %1373 = vset.pattern.permute.xlu1 %v1503_v4  ;;  %596 = vperm.xlu0 %1386, %v1304_v15  }
  0x55   : > { %455 = vperm.xlu1 %1373, %v1302_v11  }
  0x58   : > { %1389 = vset.pattern.permute.xlu0 %v1509_v16 }
  0x59   : > { %1375 = vset.pattern.permute.xlu1 %v1505_v7  ;;  %631 = vperm.xlu0 %1389, %v1586_v3  }
  0x5a   : > { %474 = vperm.xlu1 %1375, %v1302_v11  }
  0x5d   : > { %1392 = vset.pattern.permute.xlu0 %v1504_v6 }
  0x5e   : > { %1376 = vset.pattern.permute.xlu1 %v1506_v8  ;;  %653 = vperm.xlu0 %1392, %v1644_v17  }
  0x5f   : > { %484 = vperm.xlu1 %1376, %v1302_v11  }
  0x62   : > { %1395 = vset.pattern.permute.xlu0 %v1510_v18 }
  0x63   : > { %1378 = vset.pattern.permute.xlu1 %v1507_v12  ;;  %688 = vperm.xlu0 %1395, %v1586_v3  }
  0x64   : > { %508 = vperm.xlu1 %1378, %v1594_v5  }
  0x67   : > { %1398 = vset.pattern.permute.xlu0 %v1504_v6 }
  0x68   : > { %1379 = vset.pattern.permute.xlu1 %v1503_v4  ;;  %723 = vperm.xlu0 %1398, %v1655_v19  }
  0x69   : > { %517 = vperm.xlu1 %1379, %v1303_v13  }
  0x6c   : > { %1401 = vset.pattern.permute.xlu0 %v1511_v20 }
  0x6d   : > { %1381 = vset.pattern.permute.xlu1 %v1505_v7  ;;  %763 = vperm.xlu0 %1401, %v1586_v3  }
  0x6e   : > { %536 = vperm.xlu1 %1381, %v1303_v13  }
  0x71   : > { %1404 = vset.pattern.permute.xlu0 %v1504_v6 }
  0x72   : > { %1382 = vset.pattern.permute.xlu1 %v1506_v8  ;;  %785 = vperm.xlu0 %1404, %v1666_v21  }
  0x73   : > { %546 = vperm.xlu1 %1382, %v1303_v13   ;;  %v1748_v13 = vld [vmem:[%s1992_s3 + $0x2c] sm:$0xf] }
  0x76   : > { %1407 = vset.pattern.permute.xlu0 %v1512_v22 }
  0x77   : > { %1384 = vset.pattern.permute.xlu1 %v1508_v14  ;;  %820 = vperm.xlu0 %1407, %v1586_v3  }
  0x78   : > { %565 = vperm.xlu1 %1384, %v1594_v5  }
  0x7b   : > { %1410 = vset.pattern.permute.xlu0 %v1504_v6 }
  0x7c   : > { %1385 = vset.pattern.permute.xlu1 %v1503_v4  ;;  %855 = vperm.xlu0 %1410, %v1685_v24  }
  0x7d   : > { %587 = vperm.xlu1 %1385, %v1304_v15  }
  0x80   : > { %1413 = vset.pattern.permute.xlu0 %v1513_v31 }
  0x81   : > { %1387 = vset.pattern.permute.xlu1 %v1505_v7  ;;  %890 = vperm.xlu0 %1413, %v1586_v3  }
  0x82   : > { %606 = vperm.xlu1 %1387, %v1304_v15  }
  0x85   : > { %1416 = vset.pattern.permute.xlu0 %v1504_v6 }
  0x86   : > { %1388 = vset.pattern.permute.xlu1 %v1506_v8  ;;  %912 = vperm.xlu0 %1416, %v1713_v36  }
  0x87   : > { %616 = vperm.xlu1 %1388, %v1304_v15  }
  0x8a   : > { %1419 = vset.pattern.permute.xlu0 %v1514_v61 }
  0x8b   : > { %1390 = vset.pattern.permute.xlu1 %v1509_v16  ;;  %947 = vperm.xlu0 %1419, %v1586_v3  }
  0x8c   : > { %635 = vperm.xlu1 %1390, %v1594_v5  }
  0x8f   : > { %1422 = vset.pattern.permute.xlu0 %v1504_v6 }
  0x90   : > { %1391 = vset.pattern.permute.xlu1 %v1503_v4  ;;  %982 = vperm.xlu0 %1422, %v1748_v13  }
  0x91   : > { %644 = vperm.xlu1 %1391, %v1644_v17  }
  0x95   : > { %1393 = vset.pattern.permute.xlu1 %v1505_v7 }
  0x96   : > { %663 = vperm.xlu1 %1393, %v1644_v17  }
  0x99   : > { %v258_v33 = vpop.permute.xlu1 %257  ;;  %v246_v34 = vpop.permute.xlu0 %245 }
  0x9a   : > { %1394 = vset.pattern.permute.xlu1 %v1506_v8 }
  0x9b   : > { %673 = vperm.xlu1 %1394, %v1644_v17  }
  0x9d   : > { %v251_v37 = vpop.permute.xlu0 %250 }
  0x9e   : > { %v253_v39 = vsel %vm242_vm1, %v246_v34, %v251_v37  ;;  %v267_v40 = vpop.permute.xlu1 %266 }
  0x9f   : > { %v263_v42 = vrot.slane %v253_v39, %v1694_v29  ;;  %v272_v43 = vrot.slane %v253_v39, %v1707_v35  ;;  %1396 = vset.pattern.permute.xlu1 %v1510_v18  ;;  %v282_v46 = vrot.slane %v253_v39, %v1718_v38  ;;  %v292_v48 = vrot.slane %v253_v39, %v1721_v41 }
  0xa0   : > { %692 = vperm.xlu1 %1396, %v1594_v5  }
  0xa1   : > { %v264_v44 = vmul.f32 %v263_v42, %v258_v33  ;;  %v273_v45 = vmul.f32 %v272_v43, %v267_v40  ;;  %v1515_v33 = vmov 12   ;;  %v1773_v43 = vld [vmem:[%s1992_s3 + $0x30] sm:$0xf] }
  0xa2   : > { %v277_v47 = vpop.permute.xlu0 %276  ;;  %1425 = vset.pattern.permute.xlu0 %v1515_v33 }
  0xa3   : > { %v274_v50 = vadd.f32 %v273_v45, %v264_v44  ;;  %v283_v51 = vmul.f32 %v282_v46, %v277_v47  ;;  %v287_v52 = vpop.permute.xlu1 %286  ;;  %1022 = vperm.xlu0 %1425, %v1586_v3  }
  0xa4   : > { %v293_v53 = vmul.f32 %v292_v48, %v287_v52  ;;  %1397 = vset.pattern.permute.xlu1 %v1503_v4 }
  0xa5   : > { %v284_v54 = vadd.f32 %v283_v51, %v274_v50  ;;  %714 = vperm.xlu1 %1397, %v1655_v19  }
  0xa7   : > { %v294_v55 = vadd.f32 %v293_v53, %v284_v54  ;;  %v306_v56 = vpop.permute.xlu0 %305  ;;  %1428 = vset.pattern.permute.xlu0 %v1504_v6 }
  0xa8   : > { %v302_v57 = vpop.permute.xlu1 %301  ;;  %1044 = vperm.xlu0 %1428, %v1773_v43  }
  0xa9   : > { %v308_v58 = vsel %vm299_vm2, %v302_v57, %v306_v56  ;;  %1399 = vset.pattern.permute.xlu1 %v1505_v7 }
  0xaa   : > { %v309_v59 = vmul.f32 %v308_v58, %v294_v55  ;;  %733 = vperm.xlu1 %1399, %v1655_v19   ;;  %v426_v55 = vrot.slane %v1697_v30, %v1721_v41 }
  0xac   : > { %v311_v60 = vsel %vm310_vm3, %v309_v59, -inf  ;;  %vm427_vm5 = vcmp.eq.s32.totalorder %v426_v55, 1 }
  0xad   : > { %v312_v62 = vrot.slane %v311_v60, 4  ;;  %v329_v0 = vpop.permute.xlu1 %328 }
  0xae   : > { %1400 = vset.pattern.permute.xlu1 %v1506_v8 }
  0xaf   : > { %v313_v63 = vmax.f32 %v311_v60, %v312_v62  ;;  %743 = vperm.xlu1 %1400, %v1655_v19  }
  0xb1   : > { %v314_v1 = vrot.slane %v313_v63, 2 }
  0xb2   : > { %v338_v10 = vpop.permute.xlu1 %337 }
  0xb3   : > { %v315_v2 = vmax.f32 %v313_v63, %v314_v1  ;;  %1402 = vset.pattern.permute.xlu1 %v1511_v20  ;;  %v348_v20 = vpop.permute.xlu0 %347 }
  0xb4   : > { %767 = vperm.xlu1 %1402, %v1594_v5  }
  0xb5   : > { %v316_v9 = vrot.slane %v315_v2, 1 }
  0xb7   : > { %v317_v11 = vmax.f32 %v315_v2, %v316_v9  ;;  %v358_v14 = vpop.permute.xlu1 %357  ;;  %v377_v40 = vpop.permute.xlu0 %376  ;;  %v1516_v2 = vmov 13  }
  0xb8   : > { %1403 = vset.pattern.permute.xlu1 %v1503_v4  ;;  %1431 = vset.pattern.permute.xlu0 %v1516_v2 }
  0xb9   : > { %v318_v12 = vmax.f32 %v317_v11, 1e-30  ;;  %776 = vperm.xlu1 %1403, %v1666_v21   ;;  %1079 = vperm.xlu0 %1431, %v1586_v3  }
  0xbb   : > { %1445 = vrcp.f32 %v318_v12  ;;  %v395_v47 = vpop.permute.xlu0 %394 }
  0xbc   : > { %v373_v15 = vpop.permute.xlu1 %372 }
  0xbd   : > { %1405 = vset.pattern.permute.xlu1 %v1505_v7  ;;  %v379_v45 = vsel %vm370_vm4, %v373_v15, %v377_v40  ;;  %1434 = vset.pattern.permute.xlu0 %v1504_v6 }
  0xbe   : > { %795 = vperm.xlu1 %1405, %v1666_v21  }
  0xbf   : > { %v430_v62 = vpop.permute.xlu0 %429 }
  0xc1   : > { %v386_v25 = vpop.permute.xlu1 %385 }
  0xc2   : > { %1406 = vset.pattern.permute.xlu1 %v1506_v8 }
  0xc3   : > { %805 = vperm.xlu1 %1406, %v1666_v21  }
  0xc5   : > { %v1755_v16 = vpop.eup %1445 }
  0xc6   : > { %v320_v17 = vmul.f32 %v1755_v16, %v309_v59  ;;  %v405_v42 = vpop.permute.xlu1 %404 }
  0xc7   : > { %1408 = vset.pattern.permute.xlu1 %v1512_v22 }
  0xc8   : > { %v334_v18 = vrot.slane %v320_v17, %v1694_v29  ;;  %v343_v19 = vrot.slane %v320_v17, %v1707_v35  ;;  %v353_v23 = vrot.slane %v320_v17, %v1718_v38  ;;  %824 = vperm.xlu1 %1408, %v1594_v5   ;;  %v363_v21 = vrot.slane %v320_v17, %v1721_v41  ;;  %v493_v17 = vld [vmem:[%s1678_s8] sm:$0x2] }
  0xca   : > { %v335_v26 = vmul.f32 %v334_v18, %v329_v0  ;;  %v344_v27 = vmul.f32 %v343_v19, %v338_v10  ;;  %v354_v34 = vmul.f32 %v353_v23, %v348_v20  ;;  %v364_v37 = vmul.f32 %v363_v21, %v358_v14  ;;  %v1804_v20 = vld [vmem:[%s1992_s3 + $0x34] sm:$0xf] }
  0xcb   : > { %v415_v50 = vpop.permute.xlu1 %414  ;;  %v494_v19 = vunpack.c.0.s8 %v493_v17  ;;  %1114 = vperm.xlu0 %1434, %v1804_v20  }
  0xcc   : > { %v345_v22 = vadd.f32 %v344_v27, %v335_v26  ;;  %1409 = vset.pattern.permute.xlu1 %v1503_v4  ;;  %v500_v26 = vsub.s32 4, %v1689_v28 }
  0xcd   : > { %846 = vperm.xlu1 %1409, %v1685_v24  }
  0xce   : > { %v355_v39 = vadd.f32 %v354_v34, %v345_v22  ;;  %v465_v22 = vpop.permute.xlu0 %464 }
  0xcf   : > { %v434_v60 = vpop.permute.xlu1 %433 }
  0xd0   : > { %v365_v44 = vadd.f32 %v364_v37, %v355_v39  ;;  %v436_v0 = vsel %vm427_vm5, %v430_v62, %v434_v60 }
  0xd1   : > { %1411 = vset.pattern.permute.xlu1 %v1505_v7 }
  0xd2   : > { %v380_v46 = vmul.f32 %v379_v45, %v365_v44  ;;  %865 = vperm.xlu1 %1411, %v1685_v24  }
  0xd4   : > { %v391_v48 = vrot.slane %v380_v46, %v1694_v29  ;;  %v410_v49 = vrot.slane %v380_v46, %v1718_v38  ;;  %v400_v51 = vrot.slane %v380_v46, %v1707_v35  ;;  %v420_v53 = vrot.slane %v380_v46, %v1721_v41 }
  0xd5   : > { %v1517_v46 = vmov 14  }
  0xd6   : > { %v392_v52 = vmul.f32 %v391_v48, %v386_v25  ;;  %v401_v54 = vmul.f32 %v400_v51, %v395_v47  ;;  %1412 = vset.pattern.permute.xlu1 %v1506_v8  ;;  %v411_v56 = vmul.f32 %v410_v49, %v405_v42  ;;  %v421_v58 = vmul.f32 %v420_v53, %v415_v50 }
  0xd7   : > { %875 = vperm.xlu1 %1412, %v1685_v24   ;;  %v495_v25 = vcvt.s32.f32 %v494_v19  ;;  %1437 = vset.pattern.permute.xlu0 %v1517_v46 }
  0xd8   : > { %v402_v57 = vadd.f32 %v401_v54, %v392_v52  ;;  %1149 = vperm.xlu0 %1437, %v1586_v3   ;;  %v505_v52 = vpop.permute.xlu0 %504 }
  0xd9   : > { %vm496_vm6 = vcmp.gt.f32.partialorder %v495_v25, 0.5 }
  0xda   : > { %v412_v59 = vadd.f32 %v411_v56, %v402_v57  ;;  %v1814_v21 = vsel %vm496_vm6, 1, %v1503_v4  ;;  %v557_v56 = vsub.s32 5, %v1689_v28 }
  0xdb   : > { %1414 = vset.pattern.permute.xlu1 %v1513_v31  ;;  %v456_v31 = vpop.permute.xlu1 %455  ;;  %v501_v39 = vrot.slane %v1814_v21, %v500_v26 }
  0xdc   : > { %v422_v63 = vadd.f32 %v421_v58, %v412_v59  ;;  %894 = vperm.xlu1 %1414, %v1594_v5   ;;  %1440 = vset.pattern.permute.xlu0 %v1504_v6  ;;  %v527_v62 = vpop.permute.xlu0 %526  ;;  %v558_v6 = vrot.slane %v1814_v21, %v557_v56 }
  0xdd   : > { %vm502_vm7 = vcmp.eq.s32.totalorder %v501_v39, 1 }
  0xde   : > { %v437_v1 = vmul.f32 %v436_v0, %v422_v63  ;;  %vm559_vm8 = vcmp.eq.s32.totalorder %v558_v6, 1 }
  0xdf   : > { %v475_v14 = vpop.permute.xlu1 %474 }
  0xe0   : > { %v438_v30 = vsel %vm310_vm3, %v437_v1, -inf  ;;  %1415 = vset.pattern.permute.xlu1 %v1503_v4 }
  0xe1   : > { %v439_v24 = vrot.slane %v438_v30, 4  ;;  %903 = vperm.xlu1 %1415, %v1713_v36  }
  0xe3   : > { %v440_v9 = vmax.f32 %v438_v30, %v439_v24  ;;  %v485_v23 = vpop.permute.xlu1 %484 }
  0xe5   : > { %v441_v10 = vrot.slane %v440_v9, 2  ;;  %1417 = vset.pattern.permute.xlu1 %v1505_v7 }
  0xe6   : > { %922 = vperm.xlu1 %1417, %v1713_v36  }
  0xe7   : > { %v442_v11 = vmax.f32 %v440_v9, %v441_v10 }
  0xe9   : > { %v443_v12 = vrot.slane %v442_v11, 1 }
  0xea   : > { %1418 = vset.pattern.permute.xlu1 %v1506_v8 }
  0xeb   : > { %v444_v15 = vmax.f32 %v442_v11, %v443_v12  ;;  %932 = vperm.xlu1 %1418, %v1713_v36   ;;  %v509_v36 = vpop.permute.xlu1 %508 }
  0xec   : > { %v511_v59 = vsel %vm502_vm7, %v505_v52, %v509_v36  ;;  %v1518_v36 = vmov 15  }
  0xed   : > { %v445_v18 = vmax.f32 %v444_v15, 1e-30 }
  0xef   : > { %1447 = vrcp.f32 %v445_v18  ;;  %1420 = vset.pattern.permute.xlu1 %v1514_v61  ;;  %v518_v37 = vpop.permute.xlu1 %517 }
  0xf0   : > { %951 = vperm.xlu1 %1420, %v1594_v5   ;;  %1449 = vlog2.f32 %v1755_v16 }
  0xf3   : > { %v537_v53 = vpop.permute.xlu1 %536 }
  0xf4   : > { %1421 = vset.pattern.permute.xlu1 %v1503_v4 }
  0xf5   : > { %973 = vperm.xlu1 %1421, %v1748_v13  }
  0xf9   : > { %v1448_v61 = vpop.eup %1447  ;;  %1423 = vset.pattern.permute.xlu1 %v1505_v7 }
  0xfa   : > { %v447_v27 = vmul.f32 %v1448_v61, %v437_v1  ;;  %1451 = vlog2.f32 %v1448_v61  ;;  %992 = vperm.xlu1 %1423, %v1748_v13   ;;  %v1450_v40 = vpop.eup %1449  ;;  %v547_v1 = vpop.permute.xlu1 %546 }
  0xfb   : > { %v322_v49 = vmul.f32 0.6931472, %v1450_v40 }
  0xfc   : > { %v461_v16 = vrot.slane %v447_v27, %v1694_v29  ;;  %v480_v32 = vrot.slane %v447_v27, %v1718_v38  ;;  %v470_v34 = vrot.slane %v447_v27, %v1707_v35  ;;  %v490_v44 = vrot.slane %v447_v27, %v1721_v41 }
  0xfd   : > { %v323_v57 = vsub.f32 0.0, %v322_v49 }
  0xfe   : > { %v462_v42 = vmul.f32 %v461_v16, %v456_v31  ;;  %v471_v45 = vmul.f32 %v470_v34, %v465_v22  ;;  %1424 = vset.pattern.permute.xlu1 %v1506_v8  ;;  %v481_v47 = vmul.f32 %v480_v32, %v475_v14  ;;  %v491_v50 = vmul.f32 %v490_v44, %v485_v23  ;;  %v566_v12 = vpop.permute.xlu1 %565  ;;  %v562_v14 = vpop.permute.xlu0 %561 }
  0xff   : > { %1002 = vperm.xlu1 %1424, %v1748_v13   ;;  %v1834_v13 = vld [vmem:[%s1992_s3 + $0x38] sm:$0xf]  ;;  %v568_v18 = vsel %vm559_vm8, %v562_v14, %v566_v12  ;;  %v627_v44 = vsub.s32 6, %v1689_v28 }
 0x100   : > { %v472_v48 = vadd.f32 %v471_v45, %v462_v42  ;;  %1171 = vperm.xlu0 %1440, %v1834_v13  }
 0x101   : > { %v628_v52 = vrot.slane %v1814_v21, %v627_v44 }
 0x102   : > { %v482_v51 = vadd.f32 %v481_v47, %v472_v48  ;;  %v588_v16 = vpop.permute.xlu1 %587  ;;  %v597_v48 = vpop.permute.xlu0 %596 }
 0x103   : > { %1426 = vset.pattern.permute.xlu1 %v1515_v33  ;;  %vm629_vm9 = vcmp.eq.s32.totalorder %v628_v52, 1 }
 0x104   : > { %v1452_v54 = vpop.eup %1451  ;;  %v492_v55 = vadd.f32 %v491_v50, %v482_v51  ;;  %1026 = vperm.xlu1 %1426, %v1594_v5   ;;  %1443 = vset.pattern.permute.xlu0 %v1518_v36 }
 0x105   : > { %v449_v58 = vmul.f32 0.6931472, %v1452_v54  ;;  %1206 = vperm.xlu0 %1443, %v1586_v3  }
 0x106   : > { %v512_v60 = vmul.f32 %v511_v59, %v492_v55 }
 0x107   : > { %v1838_v33 = vsub.f32 %v323_v57, %v449_v58  ;;  %v632_v58 = vpop.permute.xlu0 %631 }
 0x108   : > { %v523_v63 = vrot.slane %v512_v60, %v1694_v29  ;;  %v542_v0 = vrot.slane %v512_v60, %v1718_v38  ;;  %v532_v30 = vrot.slane %v512_v60, %v1707_v35  ;;  %1427 = vset.pattern.permute.xlu1 %v1503_v4  ;;  %v552_v9 = vrot.slane %v512_v60, %v1721_v41 }
 0x109   : > { %1035 = vperm.xlu1 %1427, %v1773_v43  }
 0x10a   : > { %v524_v24 = vmul.f32 %v523_v63, %v518_v37  ;;  %v533_v31 = vmul.f32 %v532_v30, %v527_v62  ;;  %v543_v10 = vmul.f32 %v542_v0, %v537_v53  ;;  %v553_v15 = vmul.f32 %v552_v9, %v547_v1 }
 0x10b   : > { %v684_v63 = vsub.s32 7, %v1689_v28  ;;  %v654_v6 = vpop.permute.xlu0 %653 }
 0x10c   : > { %v534_v11 = vadd.f32 %v533_v31, %v524_v24 }
 0x10d   : > { %1429 = vset.pattern.permute.xlu1 %v1505_v7 }
 0x10e   : > { %v544_v17 = vadd.f32 %v543_v10, %v534_v11  ;;  %1054 = vperm.xlu1 %1429, %v1773_v43   ;;  %v685_v11 = vrot.slane %v1814_v21, %v684_v63 }
 0x110   : > { %v554_v19 = vadd.f32 %v553_v15, %v544_v17  ;;  %vm686_vm10 = vcmp.eq.s32.totalorder %v685_v11, 1 }
 0x112   : > { %v569_v23 = vmul.f32 %v568_v18, %v554_v19  ;;  %1430 = vset.pattern.permute.xlu1 %v1506_v8  ;;  %v689_v18 = vpop.permute.xlu0 %688 }
 0x113   : > { %1064 = vperm.xlu1 %1430, %v1773_v43   ;;  %v607_v43 = vpop.permute.xlu1 %606 }
 0x114   : > { %v570_v25 = vsel %vm310_vm3, %v569_v23, -inf }
 0x115   : > { %v571_v61 = vrot.slane %v570_v25, 4 }
 0x117   : > { %v572_v27 = vmax.f32 %v570_v25, %v571_v61  ;;  %1432 = vset.pattern.permute.xlu1 %v1516_v2  ;;  %v617_v3 = vpop.permute.xlu1 %616 }
 0x118   : > { %1083 = vperm.xlu1 %1432, %v1594_v5  }
 0x119   : > { %v573_v32 = vrot.slane %v572_v27, 2 }
 0x11b   : > { %v574_v22 = vmax.f32 %v572_v27, %v573_v32  ;;  %v636_v2 = vpop.permute.xlu1 %635 }
 0x11c   : > { %1433 = vset.pattern.permute.xlu1 %v1503_v4  ;;  %v638_v1 = vsel %vm629_vm9, %v632_v58, %v636_v2  ;;  %v752_v2 = vld [vmem:[%s1678_s8 + $0x2] sm:$0x1] }
 0x11d   : > { %v575_v34 = vrot.slane %v574_v22, 1  ;;  %1105 = vperm.xlu1 %1433, %v1804_v20  }
 0x11f   : > { %v576_v37 = vmax.f32 %v574_v22, %v575_v34  ;;  %v645_v50 = vpop.permute.xlu1 %644 }
 0x121   : > { %v577_v39 = vmax.f32 %v576_v37, 1e-30  ;;  %1435 = vset.pattern.permute.xlu1 %v1505_v7 }
 0x122   : > { %1124 = vperm.xlu1 %1435, %v1804_v20  }
 0x123   : > { %1453 = vrcp.f32 %v577_v39  ;;  %v664_v59 = vpop.permute.xlu1 %663 }
 0x126   : > { %1436 = vset.pattern.permute.xlu1 %v1506_v8 }
 0x127   : > { %1134 = vperm.xlu1 %1436, %v1804_v20   ;;  %v674_v31 = vpop.permute.xlu1 %673 }
 0x12b   : > { %1438 = vset.pattern.permute.xlu1 %v1517_v46 }
 0x12c   : > { %1153 = vperm.xlu1 %1438, %v1594_v5  }
 0x12d   : > { %v1454_v40 = vpop.eup %1453 }
 0x12e   : > { %v579_v42 = vmul.f32 %v1454_v40, %v569_v23  ;;  %1455 = vlog2.f32 %v1454_v40  ;;  %v753_v40 = vunpack.c.0.s8 %v752_v2 }
 0x130   : > { %v593_v45 = vrot.slane %v579_v42, %v1694_v29  ;;  %v612_v47 = vrot.slane %v579_v42, %v1718_v38  ;;  %v602_v49 = vrot.slane %v579_v42, %v1707_v35  ;;  %1439 = vset.pattern.permute.xlu1 %v1503_v4  ;;  %v622_v46 = vrot.slane %v579_v42, %v1721_v41 }
 0x131   : > { %1162 = vperm.xlu1 %1439, %v1834_v13   ;;  %v754_v42 = vcvt.s32.f32 %v753_v40 }
 0x132   : > { %v594_v20 = vmul.f32 %v593_v45, %v588_v16  ;;  %v603_v51 = vmul.f32 %v602_v49, %v597_v48  ;;  %v613_v53 = vmul.f32 %v612_v47, %v607_v43  ;;  %v623_v55 = vmul.f32 %v622_v46, %v617_v3  ;;  %v724_v46 = vpop.permute.xlu0 %723 }
 0x133   : > { %vm755_vm11 = vcmp.gt.f32.partialorder %v754_v42, 0.5 }
 0x134   : > { %v604_v54 = vadd.f32 %v603_v51, %v594_v20  ;;  %v1897_v49 = vsel %vm755_vm11, 1, %v1503_v4 }
 0x135   : > { %1441 = vset.pattern.permute.xlu1 %v1505_v7 }
 0x136   : > { %v614_v57 = vadd.f32 %v613_v53, %v604_v54  ;;  %1181 = vperm.xlu1 %1441, %v1834_v13  }
 0x138   : > { %v1456_v60 = vpop.eup %1455  ;;  %v624_v62 = vadd.f32 %v623_v55, %v614_v57  ;;  %v760_v57 = vrot.slane %v1897_v49, %v1694_v29 }
 0x139   : > { %v1879_v0 = vmul.f32 0.6931472, %v1456_v60 }
 0x13a   : > { %v639_v30 = vmul.f32 %v638_v1, %v624_v62  ;;  %1442 = vset.pattern.permute.xlu1 %v1506_v8  ;;  %v764_v1 = vpop.permute.xlu0 %763  ;;  %vm761_vm12 = vcmp.eq.s32.totalorder %v760_v57, 1  ;;  %v887_v57 = vrot.slane %v1897_v49, %v1718_v38 }
 0x13b   : > { %v582_v7 = vsub.f32 %v1838_v33, %v1879_v0  ;;  %1191 = vperm.xlu1 %1442, %v1834_v13   ;;  %v693_v13 = vpop.permute.xlu1 %692 }
 0x13c   : > { %v650_v24 = vrot.slane %v639_v30, %v1694_v29  ;;  %v669_v9 = vrot.slane %v639_v30, %v1718_v38  ;;  %v659_v10 = vrot.slane %v639_v30, %v1707_v35  ;;  %v679_v8 = vrot.slane %v639_v30, %v1721_v41 }
 0x13d   : > { %v695_v25 = vsel %vm686_vm10, %v689_v18, %v693_v13  ;;  %v817_v13 = vrot.slane %v1897_v49, %v1707_v35  ;;  %vm888_vm14 = vcmp.eq.s32.totalorder %v887_v57, 1 }
 0x13e   : > { %v651_v12 = vmul.f32 %v650_v24, %v645_v50  ;;  %v660_v14 = vmul.f32 %v659_v10, %v654_v6  ;;  %v670_v15 = vmul.f32 %v669_v9, %v664_v59  ;;  %v680_v19 = vmul.f32 %v679_v8, %v674_v31 }
 0x13f   : > { %1444 = vset.pattern.permute.xlu1 %v1518_v36  ;;  %v715_v22 = vpop.permute.xlu1 %714  ;;  %vm818_vm13 = vcmp.eq.s32.totalorder %v817_v13, 1 }
 0x140   : > { %v661_v17 = vadd.f32 %v660_v14, %v651_v12  ;;  %1210 = vperm.xlu1 %1444, %v1594_v5   ;;  %v786_v12 = vpop.permute.xlu0 %785 }
 0x142   : > { %v671_v23 = vadd.f32 %v670_v15, %v661_v17 }
 0x143   : > { %v734_v37 = vpop.permute.xlu1 %733 }
 0x144   : > { %v681_v61 = vadd.f32 %v680_v19, %v671_v23  ;;  %v821_v0 = vpop.permute.xlu0 %820 }
 0x146   : > { %v696_v27 = vmul.f32 %v695_v25, %v681_v61 }
 0x147   : > { %v744_v5 = vpop.permute.xlu1 %743 }
 0x148   : > { %v697_v21 = vsel %vm310_vm3, %v696_v27, -inf }
 0x149   : > { %v698_v16 = vrot.slane %v697_v21, 4 }
 0x14b   : > { %v699_v32 = vmax.f32 %v697_v21, %v698_v16  ;;  %v768_v45 = vpop.permute.xlu1 %767 }
 0x14c   : > { %v770_v31 = vsel %vm761_vm12, %v764_v1, %v768_v45 }
 0x14d   : > { %v700_v34 = vrot.slane %v699_v32, 2 }
 0x14f   : > { %v701_v36 = vmax.f32 %v699_v32, %v700_v34  ;;  %v777_v52 = vpop.permute.xlu1 %776 }
 0x151   : > { %v702_v43 = vrot.slane %v701_v36, 1 }
 0x153   : > { %v703_v39 = vmax.f32 %v701_v36, %v702_v43  ;;  %v796_v30 = vpop.permute.xlu1 %795 }
 0x155   : > { %v704_v3 = vmax.f32 %v703_v39, 1e-30 }
 0x157   : > { %1457 = vrcp.f32 %v704_v3  ;;  %v806_v15 = vpop.permute.xlu1 %805 }
 0x15b   : > { %v825_v33 = vpop.permute.xlu1 %824 }
 0x15c   : > { %v827_v21 = vsel %vm818_vm13, %v821_v0, %v825_v33 }
 0x15f   : > { %v847_v43 = vpop.permute.xlu1 %846 }
 0x161   : > { %v1458_v47 = vpop.eup %1457 }
 0x162   : > { %v706_v48 = vmul.f32 %v1458_v47, %v696_v27  ;;  %1459 = vlog2.f32 %v1458_v47 }
 0x163   : > { %v866_v2 = vpop.permute.xlu1 %865 }
 0x164   : > { %v720_v50 = vrot.slane %v706_v48, %v1694_v29  ;;  %v739_v20 = vrot.slane %v706_v48, %v1718_v38  ;;  %v729_v51 = vrot.slane %v706_v48, %v1707_v35  ;;  %v749_v54 = vrot.slane %v706_v48, %v1721_v41 }
 0x166   : > { %v721_v53 = vmul.f32 %v720_v50, %v715_v22  ;;  %v730_v55 = vmul.f32 %v729_v51, %v724_v46  ;;  %v740_v58 = vmul.f32 %v739_v20, %v734_v37  ;;  %v750_v60 = vmul.f32 %v749_v54, %v744_v5  ;;  %v856_v46 = vpop.permute.xlu0 %855 }
 0x167   : > { %v876_v42 = vpop.permute.xlu1 %875 }
 0x168   : > { %v731_v59 = vadd.f32 %v730_v55, %v721_v53 }
 0x16a   : > { %v741_v62 = vadd.f32 %v740_v58, %v731_v59  ;;  %v891_v1 = vpop.permute.xlu0 %890 }
 0x16b   : > { %v895_v45 = vpop.permute.xlu1 %894 }
 0x16c   : > { %v1460_v6 = vpop.eup %1459  ;;  %v751_v24 = vadd.f32 %v750_v60, %v741_v62 }
 0x16d   : > { %v708_v9 = vmul.f32 0.6931472, %v1460_v6 }
 0x16e   : > { %v771_v10 = vmul.f32 %v770_v31, %v751_v24  ;;  %v897_v31 = vsel %vm888_vm14, %v891_v1, %v895_v45 }
 0x16f   : > { %v1908_v11 = vsub.f32 %v582_v7, %v708_v9 }
 0x170   : > { %v782_v8 = vrot.slane %v771_v10, %v1694_v29  ;;  %v801_v14 = vrot.slane %v771_v10, %v1718_v38  ;;  %v791_v17 = vrot.slane %v771_v10, %v1707_v35  ;;  %v811_v19 = vrot.slane %v771_v10, %v1721_v41 }
 0x172   : > { %v783_v18 = vmul.f32 %v782_v8, %v777_v52  ;;  %v792_v23 = vmul.f32 %v791_v17, %v786_v12  ;;  %v802_v25 = vmul.f32 %v801_v14, %v796_v30  ;;  %v812_v7 = vmul.f32 %v811_v19, %v806_v15  ;;  %v904_v52 = vpop.permute.xlu1 %903  ;;  %v913_v12 = vpop.permute.xlu0 %912 }
 0x174   : > { %v793_v61 = vadd.f32 %v792_v23, %v783_v18  ;;  %v944_v18 = vrot.slane %v1897_v49, %v1721_v41 }
 0x176   : > { %v803_v27 = vadd.f32 %v802_v25, %v793_v61  ;;  %v923_v30 = vpop.permute.xlu1 %922  ;;  %vm945_vm15 = vcmp.eq.s32.totalorder %v944_v18, 1 }
 0x178   : > { %v813_v16 = vadd.f32 %v812_v7, %v803_v27  ;;  %v948_v7 = vpop.permute.xlu0 %947 }
 0x17a   : > { %v828_v32 = vmul.f32 %v827_v21, %v813_v16  ;;  %v933_v17 = vpop.permute.xlu1 %932 }
 0x17c   : > { %v829_v22 = vsel %vm310_vm3, %v828_v32, -inf }
 0x17d   : > { %v830_v34 = vrot.slane %v829_v22, 4 }
 0x17e   : > { %v952_v0 = vpop.permute.xlu1 %951 }
 0x17f   : > { %v831_v36 = vmax.f32 %v829_v22, %v830_v34  ;;  %v954_v21 = vsel %vm945_vm15, %v948_v7, %v952_v0 }
 0x181   : > { %v832_v37 = vrot.slane %v831_v36, 2 }
 0x182   : > { %v974_v49 = vpop.permute.xlu1 %973 }
 0x183   : > { %v833_v39 = vmax.f32 %v831_v36, %v832_v37 }
 0x185   : > { %v834_v3 = vrot.slane %v833_v39, 1 }
 0x187   : > { %v835_v5 = vmax.f32 %v833_v39, %v834_v3  ;;  %v993_v3 = vpop.permute.xlu1 %992 }
 0x189   : > { %v836_v40 = vmax.f32 %v835_v5, 1e-30 }
 0x18b   : > { %1461 = vrcp.f32 %v836_v40  ;;  %v1011_v40 = vld [vmem:[%s1678_s8 + $0x2] sm:$0x2] }
 0x18c   : > { %v1012_v45 = vunpack.c.0.s8 %v1011_v40 }
 0x195   : > { %v1462_v47 = vpop.eup %1461 }
 0x196   : > { %v838_v48 = vmul.f32 %v1462_v47, %v828_v32  ;;  %1463 = vlog2.f32 %v1462_v47  ;;  %v1013_v47 = vcvt.s32.f32 %v1012_v45 }
 0x198   : > { %v852_v50 = vrot.slane %v838_v48, %v1694_v29  ;;  %v871_v20 = vrot.slane %v838_v48, %v1718_v38  ;;  %v861_v51 = vrot.slane %v838_v48, %v1707_v35  ;;  %v881_v54 = vrot.slane %v838_v48, %v1721_v41 }
 0x199   : > { %vm1014_vm0 = vcmp.gt.f32.partialorder %v1013_v47, 0.5 }
 0x19a   : > { %v853_v53 = vmul.f32 %v852_v50, %v847_v43  ;;  %v862_v55 = vmul.f32 %v861_v51, %v856_v46  ;;  %v872_v58 = vmul.f32 %v871_v20, %v866_v2  ;;  %v882_v60 = vmul.f32 %v881_v54, %v876_v42  ;;  %v1003_v42 = vpop.permute.xlu1 %1002 }
 0x19b   : > { %v1936_v46 = vsel %vm1014_vm0, 1, %v1503_v4 }
 0x19c   : > { %v863_v59 = vadd.f32 %v862_v55, %v853_v53  ;;  %v983_v53 = vpop.permute.xlu0 %982 }
 0x19e   : > { %v873_v62 = vadd.f32 %v872_v58, %v863_v59  ;;  %v1027_v48 = vpop.permute.xlu1 %1026 }
 0x1a0   : > { %v1464_v6 = vpop.eup %1463  ;;  %v883_v24 = vadd.f32 %v882_v60, %v873_v62  ;;  %v1019_v60 = vrot.slane %v1936_v46, %v500_v26 }
 0x1a1   : > { %v1923_v9 = vmul.f32 0.6931472, %v1464_v6  ;;  %v1023_v6 = vpop.permute.xlu0 %1022 }
 0x1a2   : > { %v898_v10 = vmul.f32 %v897_v31, %v883_v24  ;;  %v1036_v55 = vpop.permute.xlu1 %1035  ;;  %vm1020_vm1 = vcmp.eq.s32.totalorder %v1019_v60, 1 }
 0x1a3   : > { %v841_v8 = vsub.f32 %v1908_v11, %v1923_v9 }
 0x1a4   : > { %v909_v14 = vrot.slane %v898_v10, %v1694_v29  ;;  %v928_v15 = vrot.slane %v898_v10, %v1718_v38  ;;  %v918_v13 = vrot.slane %v898_v10, %v1707_v35  ;;  %v938_v23 = vrot.slane %v898_v10, %v1721_v41 }
 0x1a6   : > { %v910_v19 = vmul.f32 %v909_v14, %v904_v52  ;;  %v919_v25 = vmul.f32 %v918_v13, %v913_v12  ;;  %v929_v61 = vmul.f32 %v928_v15, %v923_v30  ;;  %v939_v11 = vmul.f32 %v938_v23, %v933_v17  ;;  %v1055_v24 = vpop.permute.xlu1 %1054  ;;  %v1045_v15 = vpop.permute.xlu0 %1044 }
 0x1a7   : > { %v1029_v12 = vsel %vm1020_vm1, %v1023_v6, %v1027_v48  ;;  %v1076_v23 = vrot.slane %v1936_v46, %v557_v56 }
 0x1a8   : > { %v920_v33 = vadd.f32 %v919_v25, %v910_v19 }
 0x1a9   : > { %vm1077_vm2 = vcmp.eq.s32.totalorder %v1076_v23, 1 }
 0x1aa   : > { %v930_v27 = vadd.f32 %v929_v61, %v920_v33  ;;  %v1065_v26 = vpop.permute.xlu1 %1064 }
 0x1ac   : > { %v940_v16 = vadd.f32 %v939_v11, %v930_v27 }
 0x1ae   : > { %v955_v32 = vmul.f32 %v954_v21, %v940_v16  ;;  %v1084_v11 = vpop.permute.xlu1 %1083 }
 0x1b0   : > { %v956_v22 = vsel %vm310_vm3, %v955_v32, -inf }
 0x1b1   : > { %v957_v34 = vrot.slane %v956_v22, 4 }
 0x1b3   : > { %v958_v36 = vmax.f32 %v956_v22, %v957_v34 }
 0x1b5   : > { %v959_v43 = vrot.slane %v958_v36, 2 }
 0x1b7   : > { %v960_v37 = vmax.f32 %v958_v36, %v959_v43  ;;  %v1106_v43 = vpop.permute.xlu1 %1105 }
 0x1b9   : > { %v961_v39 = vrot.slane %v960_v37, 1 }
 0x1bb   : > { %v962_v2 = vmax.f32 %v960_v37, %v961_v39 }
 0x1bd   : > { %v963_v5 = vmax.f32 %v962_v2, 1e-30 }
 0x1bf   : > { %1465 = vrcp.f32 %v963_v5 }
 0x1c9   : > { %v1466_v50 = vpop.eup %1465 }
 0x1ca   : > { %v965_v20 = vmul.f32 %v1466_v50, %v955_v32  ;;  %1467 = vlog2.f32 %v1466_v50 }
 0x1cc   : > { %v979_v51 = vrot.slane %v965_v20, %v1694_v29  ;;  %v998_v52 = vrot.slane %v965_v20, %v1718_v38  ;;  %v988_v54 = vrot.slane %v965_v20, %v1707_v35  ;;  %v1008_v58 = vrot.slane %v965_v20, %v1721_v41 }
 0x1ce   : > { %v980_v57 = vmul.f32 %v979_v51, %v974_v49  ;;  %v989_v59 = vmul.f32 %v988_v54, %v983_v53  ;;  %v999_v62 = vmul.f32 %v998_v52, %v993_v3  ;;  %v1009_v4 = vmul.f32 %v1008_v58, %v1003_v42  ;;  %v1125_v3 = vpop.permute.xlu1 %1124 }
 0x1d0   : > { %v990_v1 = vadd.f32 %v989_v59, %v980_v57  ;;  %v1146_v57 = vrot.slane %v1936_v46, %v627_v44 }
 0x1d2   : > { %v1000_v30 = vadd.f32 %v999_v62, %v990_v1  ;;  %v1135_v40 = vpop.permute.xlu1 %1134  ;;  %vm1147_vm4 = vcmp.eq.s32.totalorder %v1146_v57, 1 }
 0x1d4   : > { %v1468_v9 = vpop.eup %1467  ;;  %v1010_v31 = vadd.f32 %v1009_v4, %v1000_v30 }
 0x1d5   : > { %v967_v10 = vmul.f32 0.6931472, %v1468_v9 }
 0x1d6   : > { %v1030_v14 = vmul.f32 %v1029_v12, %v1010_v31  ;;  %v1154_v42 = vpop.permute.xlu1 %1153 }
 0x1d7   : > { %v1945_v17 = vsub.f32 %v841_v8, %v967_v10  ;;  %v1080_v8 = vpop.permute.xlu0 %1079 }
 0x1d8   : > { %v1041_v13 = vrot.slane %v1030_v14, %v1694_v29  ;;  %v1060_v18 = vrot.slane %v1030_v14, %v1718_v38  ;;  %v1050_v19 = vrot.slane %v1030_v14, %v1707_v35  ;;  %v1070_v61 = vrot.slane %v1030_v14, %v1721_v41 }
 0x1d9   : > { %v1086_v16 = vsel %vm1077_vm2, %v1080_v8, %v1084_v11 }
 0x1da   : > { %v1042_v25 = vmul.f32 %v1041_v13, %v1036_v55  ;;  %v1051_v33 = vmul.f32 %v1050_v19, %v1045_v15  ;;  %v1061_v0 = vmul.f32 %v1060_v18, %v1055_v24  ;;  %v1071_v27 = vmul.f32 %v1070_v61, %v1065_v26  ;;  %v1163_v52 = vpop.permute.xlu1 %1162 }
 0x1db   : > { %v1115_v20 = vpop.permute.xlu0 %1114  ;;  %v1203_v18 = vrot.slane %v1936_v46, %v684_v63 }
 0x1dc   : > { %v1052_v7 = vadd.f32 %v1051_v33, %v1042_v25 }
 0x1dd   : > { %vm1204_vm5 = vcmp.eq.s32.totalorder %v1203_v18, 1 }
 0x1de   : > { %v1062_v21 = vadd.f32 %v1061_v0, %v1052_v7  ;;  %v1182_v4 = vpop.permute.xlu1 %1181 }
 0x1df   : > { %v1150_v1 = vpop.permute.xlu0 %1149 }
 0x1e0   : > { %v1072_v32 = vadd.f32 %v1071_v27, %v1062_v21  ;;  %v1156_v24 = vsel %vm1147_vm4, %v1150_v1, %v1154_v42 }
 0x1e2   : > { %v1087_v22 = vmul.f32 %v1086_v16, %v1072_v32  ;;  %v1192_v44 = vpop.permute.xlu1 %1191 }
 0x1e3   : > { %v1172_v10 = vpop.permute.xlu0 %1171 }
 0x1e4   : > { %v1088_v34 = vsel %vm310_vm3, %v1087_v22, -inf }
 0x1e5   : > { %v1089_v36 = vrot.slane %v1088_v34, 4 }
 0x1e6   : > { %v1211_v33 = vpop.permute.xlu1 %1210 }
 0x1e7   : > { %v1090_v49 = vmax.f32 %v1088_v34, %v1089_v36  ;;  %v1207_v0 = vpop.permute.xlu0 %1206 }
 0x1e8   : > { %v1213_v7 = vsel %vm1204_vm5, %v1207_v0, %v1211_v33 }
 0x1e9   : > { %v1091_v56 = vrot.slane %v1090_v49, 2 }
 0x1eb   : > { %v1092_v37 = vmax.f32 %v1090_v49, %v1091_v56 }
 0x1ed   : > { %v1093_v39 = vrot.slane %v1092_v37, 1 }
 0x1ef   : > { %v1094_v2 = vmax.f32 %v1092_v37, %v1093_v39 }
 0x1f1   : > { %v1095_v5 = vmax.f32 %v1094_v2, 1e-30 }
 0x1f3   : > { %1469 = vrcp.f32 %v1095_v5 }
 0x1fd   : > { %v1470_v45 = vpop.eup %1469 }
 0x1fe   : > { %v1097_v47 = vmul.f32 %v1470_v45, %v1087_v22  ;;  %1471 = vlog2.f32 %v1470_v45 }
 0x200   : > { %v1111_v48 = vrot.slane %v1097_v47, %v1694_v29  ;;  %v1130_v50 = vrot.slane %v1097_v47, %v1718_v38  ;;  %v1120_v51 = vrot.slane %v1097_v47, %v1707_v35  ;;  %v1140_v54 = vrot.slane %v1097_v47, %v1721_v41 }
 0x202   : > { %v1112_v53 = vmul.f32 %v1111_v48, %v1106_v43  ;;  %v1121_v55 = vmul.f32 %v1120_v51, %v1115_v20  ;;  %v1131_v58 = vmul.f32 %v1130_v50, %v1125_v3  ;;  %v1141_v60 = vmul.f32 %v1140_v54, %v1135_v40 }
 0x204   : > { %v1122_v59 = vadd.f32 %v1121_v55, %v1112_v53 }
 0x206   : > { %v1132_v62 = vadd.f32 %v1131_v58, %v1122_v59 }
 0x208   : > { %v1472_v30 = vpop.eup %1471  ;;  %v1142_v6 = vadd.f32 %v1141_v60, %v1132_v62 }
 0x209   : > { %v1099_v9 = vmul.f32 0.6931472, %v1472_v30 }
 0x20a   : > { %v1157_v31 = vmul.f32 %v1156_v24, %v1142_v6 }
 0x20b   : > { %v1100_v12 = vsub.f32 %v1945_v17, %v1099_v9 }
 0x20c   : > { %v1168_v14 = vrot.slane %v1157_v31, %v1694_v29  ;;  %v1187_v15 = vrot.slane %v1157_v31, %v1718_v38  ;;  %v1177_v13 = vrot.slane %v1157_v31, %v1707_v35  ;;  %v1197_v19 = vrot.slane %v1157_v31, %v1721_v41 }
 0x20e   : > { %v1169_v26 = vmul.f32 %v1168_v14, %v1163_v52  ;;  %v1178_v23 = vmul.f32 %v1177_v13, %v1172_v10  ;;  %v1188_v25 = vmul.f32 %v1187_v15, %v1182_v4  ;;  %v1198_v17 = vmul.f32 %v1197_v19, %v1192_v44 }
 0x210   : > { %v1179_v61 = vadd.f32 %v1178_v23, %v1169_v26 }
 0x212   : > { %v1189_v29 = vadd.f32 %v1188_v25, %v1179_v61 }
 0x214   : > { %v1199_v38 = vadd.f32 %v1198_v17, %v1189_v29 }
 0x216   : > { %v1214_v11 = vmul.f32 %v1213_v7, %v1199_v38 }
 0x218   : > { %v1215_v35 = vsel %vm310_vm3, %v1214_v11, -inf }
 0x219   : > { %v1216_v8 = vrot.slane %v1215_v35, 4 }
 0x21b   : > { %v1217_v28 = vmax.f32 %v1215_v35, %v1216_v8 }
 0x21d   : > { %v1218_v27 = vrot.slane %v1217_v28, 2 }
 0x21f   : > { %v1219_v63 = vmax.f32 %v1217_v28, %v1218_v27 }
 0x221   : > { %v1220_v46 = vrot.slane %v1219_v63, 1 }
 0x223   : > { %v1221_v21 = vmax.f32 %v1219_v63, %v1220_v46 }
 0x225   : > { %v1222_v41 = vmax.f32 %v1221_v21, 1e-30 }
 0x227   : > { %1473 = vrcp.f32 %v1222_v41 }
 0x231   : > { %v1474_v16 = vpop.eup %1473 }
 0x232   : > { %v1224_v32 = vmul.f32 %v1474_v16, %v1214_v11  ;;  %1475 = vlog2.f32 %v1474_v16 }
 0x234   : > { %v1228_v22 = vsel %vm310_vm3, %v1224_v32, 0.0 }
 0x235   : > { %v1229_v34 = vrot.slane %v1228_v22, 4 }
 0x237   : > { %v1230_v36 = vadd.f32 %v1229_v34, %v1228_v22 }
 0x239   : > { %v1231_v49 = vrot.slane %v1230_v36, 2 }
 0x23b   : > { %v1232_v43 = vadd.f32 %v1231_v49, %v1230_v36 }
 0x23c   : > { %v1476_v56 = vpop.eup %1475 }
 0x23d   : > { %v1226_v37 = vmul.f32 0.6931472, %v1476_v56  ;;  %v1233_v39 = vrot.slane %v1232_v43, 1 }
 0x23f   : > { %v1227_v3 = vsub.f32 %v1100_v12, %v1226_v37  ;;  %v1234_v2 = vadd.f32 %v1233_v39, %v1232_v43 }
 0x241   : > { %1477 = vlog2.f32 %v1234_v2 }
 0x24b   : > { %v1478_v5 = vpop.eup %1477 }
 0x24c   : > { %v1236_v40 = vmul.f32 0.6931472, %v1478_v5 }
 0x24e   : > { %v1237_v42 = vadd.f32 %v1236_v40, %v1227_v3 }
 0x250   : > { %1238 = vst [vmem:[%s230_s28] sm:$0x1] %v1237_v42 }
 0x251 PF: > { %p11_p9 = scmp.ge.s32.totalorder %s1561_s19, 4   ;;  %s1994_s15 = smov %s1497_s16 }
 0x252   : > { %s1995_s16 = smov %s1570_s22  ;;  %s1996_s17 = smov %s1561_s19 }
 0x253   :  { %13 = sbr.rel (!%p11_p9) target bundleno = 2 (0x2), region = 119 }

</bundles_post_ra>
